<compile_context>
chip_gen: v6e
topology: v6e:2x2x1
jax: 0.10.0
libtpu: 0.0.40
codegen_flags: <defaults>
</compile_context>

<pallas_src>
import jax
import jax.numpy as jnp
import numpy as np
from jax.experimental import pallas as pl
from jax.experimental.pallas import tpu as pltpu


def _round_up(x, m):
    return ((x + m - 1) // m) * m


def _vmem_limit_bytes(buf_bytes):
    # double buffering (x2) + headroom (x2); clamp so we never request more scoped
    # VMEM than v7x (64 MiB physical) can comfortably provide.
    need = 4 * int(buf_bytes)
    return int(min(max(need, 16 << 20), 48 << 20))


def _pick_vocab_tile(vp, cap=1024):
    """Largest multiple-of-128 divisor of vp that is <= cap (vp itself if small)."""
    if vp <= cap:
        return vp
    for cand in range(cap, 127, -128):
        if vp % cand == 0:
            return cand
    return 128


# --------------------------- kernel 1: recurrence ----------------------------


def _lstm_recurrence_kernel(xg_ref, fg_ref, whh_ref, b_ref, h_out_ref):
    """One grid step = full recurrence for one batch block.

    xg_ref  : (T, BB, 4*Hp) f32   precomputed x_t @ W_ih (gate-blocked, padded)
    fg_ref  : (BB, 4*Hp)    f32   precomputed feat_proj @ W_ih (init_state input)
    whh_ref : (Hp, 4*Hp)    bf16  recurrent weights (gate-blocked, padded)
    b_ref   : (1, 4*Hp)     f32   bias
    h_out   : (T, BB, Hp)   bf16  hidden state of every step
    """
    T, BB, G = xg_ref.shape
    Hp = h_out_ref.shape[-1]

    w_hh = whh_ref[...]                                    # resident bf16 weights
    b = jnp.broadcast_to(b_ref[...], (BB, G))              # hoisted bias broadcast

    def cell(x_gates_f32, h_f32, c_f32):
        # only h @ W_hh (K = Hp) sits on the serial critical path now
        gates = x_gates_f32 + b + jnp.dot(
            h_f32.astype(w_hh.dtype), w_hh, preferred_element_type=jnp.float32)
        i = jax.nn.sigmoid(gates[:, 0 * Hp:1 * Hp])
        f = jax.nn.sigmoid(gates[:, 1 * Hp:2 * Hp])
        g = jnp.tanh(gates[:, 2 * Hp:3 * Hp])
        o = jax.nn.sigmoid(gates[:, 3 * Hp:4 * Hp])
        c_new = f * c_f32 + i * g
        h_new = o * jnp.tanh(c_new)
        return h_new, c_new

    # init_state: projected image feature through the cell with zero state.
    zeros = jnp.zeros((BB, Hp), jnp.float32)
    h0, c0 = cell(fg_ref[...], zeros, zeros)

    def body(t, carry):
        h, c = carry
        h_new, c_new = cell(xg_ref[t], h, c)
        h_out_ref[t] = h_new.astype(h_out_ref.dtype)       # dense (BB,Hp) tile store
        return (h_new, c_new)

    # full unroll only for short captions; partial unroll keeps store/next-matmul
    # overlap without inflating vreg live ranges & compile time for large T.
    unroll = T if T <= 16 else 8
    jax.lax.fori_loop(0, T, body, (h0, c0), unroll=unroll)


# ------------------------ kernel 2: vocab projection --------------------------


def _vocab_proj_kernel(h_ref, w_ref, b_ref, out_ref):
    """Lane-dense GEMM: h (tt,Bp,Hp) @ W_out (Hp,tv) -> logits (tt,Bp,tv).

    Emits time-major logits with ONE unmasked full-block store (no per-row masked
    sublane stores); the single (T,B) swap happens once in the wrapper.
    """
    tt, Bp, Hp = h_ref.shape
    tv = out_ref.shape[-1]
    h2 = h_ref[...].reshape(tt * Bp, Hp)                   # layout-safe: Bp%8==0, Hp%128==0
    logits = jnp.dot(h2, w_ref[...], preferred_element_type=jnp.float32) + b_ref[...]
    out_ref[...] = logits.reshape(tt, Bp, tv)


# ------------------------- one-time parameter packing -------------------------


def prepare_lm_params(params):
    """One-time packing / padding / casting of weights (cache across forward calls).

    The input projection is folded into the tables so the serial recurrence only
    multiplies by W_hh:
        emb_gates    = embedding @ W_ih   (V, 4*Hp)  -> gathered per token
        feat_gates_w = W_feat   @ W_ih    (F, 4*Hp)  -> used by init_state
    Gate blocks are padded to Hp (multiple of 128) so gate slices are lane-aligned.
    """
    emb = params["embedding"]
    V, _E = emb.shape
    H = params["w_hh"].shape[0]
    Hp = _round_up(H, 128)
    Vp = _round_up(V, 128)
    f32, bf16 = jnp.float32, jnp.bfloat16

    def gate_blocked(w, rows_out=None):
        R = w.shape[0]
        rows_out = R if rows_out is None else rows_out
        out = jnp.zeros((rows_out, 4 * Hp), f32)
        for g in range(4):
            out = out.at[:R, g * Hp:g * Hp + H].set(w[:, g * H:(g + 1) * H])
        return out

    return {
        "emb_gates": gate_blocked(emb @ params["w_ih"]),                   # (V, 4*Hp) f32
        "feat_gates_w": gate_blocked(params["w_feat"] @ params["w_ih"]),   # (F, 4*Hp) f32
        "w_hh": gate_blocked(params["w_hh"], rows_out=Hp).astype(bf16),    # (Hp, 4*Hp)
        "b": gate_blocked(params["b"]),                                    # (1, 4*Hp) f32
        "w_out": jnp.zeros((Hp, Vp), f32).at[:H, :V].set(params["w_out"]).astype(bf16),
        "b_out": jnp.zeros((1, Vp), f32).at[:, :V].set(params["b_out"]),
        "H": H, "Hp": Hp, "V": V, "Vp": Vp,
    }


# --------------------------------- wrapper -----------------------------------


def language_model_forward(prep, input_feature, input_sentence):
    """Pallas-backed teacher-forcing forward.  Returns logits (B, T, V)."""
    B, T = input_sentence.shape
    Hp, V, Vp = prep["Hp"], prep["V"], prep["Vp"]
    G = 4 * Hp
    f32, bf16 = jnp.float32, jnp.bfloat16

    # Batch padding; split into 2 parallel blocks when big enough so that the
    # second TensorCore on v7x runs half the recurrence (harmless on v5e/v6e).
    Bp = _round_up(max(B, 8), 8)
    nb = 2 if Bp >= 16 else 1
    Bp = _round_up(Bp, 8 * nb)
    BB = Bp // nb

    # --- glue (XLA): prepare_feat + hoisted input projection via table gather ---
    feat_gates = input_feature @ prep["feat_gates_w"]              # (B, 4*Hp) f32
    feat_p = jnp.zeros((Bp, G), f32).at[:B].set(feat_gates)

    xg = prep["emb_gates"][input_sentence.T]                       # (T, B, 4*Hp) f32
    xg_p = jnp.zeros((T, Bp, G), f32).at[:, :B].set(xg)

    # --- kernel 1: serial LSTM recurrence (only h @ W_hh on the critical chain) ---
    k1_bytes = (T * BB * G * 4 + BB * G * 4 + Hp * G * 2 + G * 4 + T * BB * Hp * 2)
    h_all = pl.pallas_call(
        _lstm_recurrence_kernel,
        out_shape=jax.ShapeDtypeStruct((T, Bp, Hp), bf16),
        grid_spec=pltpu.PrefetchScalarGridSpec(
            num_scalar_prefetch=0,
            grid=(nb,),
            in_specs=[
                pl.BlockSpec((T, BB, G), lambda bi: (0, bi, 0)),   # precomputed x-gates
                pl.BlockSpec((BB, G), lambda bi: (bi, 0)),         # feature gates
                pl.BlockSpec((Hp, G), lambda bi: (0, 0)),          # W_hh (resident)
                pl.BlockSpec((1, G), lambda bi: (0, 0)),           # bias
            ],
            out_specs=pl.BlockSpec((T, BB, Hp), lambda bi: (0, bi, 0)),
        ),
        compiler_params=pltpu.CompilerParams(
            dimension_semantics=("parallel",),
            vmem_limit_bytes=_vmem_limit_bytes(k1_bytes)),
    )(xg_p, feat_p, prep["w_hh"], prep["b"])

    # --- kernel 2: vocab projection, wide lane-dense vocab tiles, 1 dense store ---
    tt = T                             # equals full dim => legal block
    tv = _pick_vocab_tile(Vp)          # 512-1024 for real vocabs; Vp if it fits
    k2_bytes = (tt * Bp * Hp * 2 + Hp * tv * 2 + tv * 4 + tt * Bp * tv * 4)
    logits_tm = pl.pallas_call(
        _vocab_proj_kernel,
        out_shape=jax.ShapeDtypeStruct((T, Bp, Vp), f32),
        grid_spec=pltpu.PrefetchScalarGridSpec(
            num_scalar_prefetch=0,
            grid=(pl.cdiv(T, tt), Vp // tv),   # vi innermost: h block stays resident
            in_specs=[
                pl.BlockSpec((tt, Bp, Hp), lambda ti, vi: (ti, 0, 0)),  # hidden states
                pl.BlockSpec((Hp, tv), lambda ti, vi: (0, vi)),         # W_out tile
                pl.BlockSpec((1, tv), lambda ti, vi: (0, vi)),          # b_out tile
            ],
            out_specs=pl.BlockSpec((tt, Bp, tv), lambda ti, vi: (ti, 0, vi)),
        ),
        compiler_params=pltpu.CompilerParams(
            dimension_semantics=("parallel", "parallel"),
            vmem_limit_bytes=_vmem_limit_bytes(k2_bytes)),
    )(h_all, prep["w_out"], prep["b_out"])

    # Single XLA pass: (T,B) swap fused with the un-padding slice.
    return jnp.transpose(logits_tm, (1, 0, 2))[:B, :, :V]


# ---------------------------- pure-JAX reference ------------------------------


def language_model_reference(params, input_feature, input_sentence):
    B, T = input_sentence.shape
    H = params["w_hh"].shape[0]

    def cell(x, h, c):
        g = x @ params["w_ih"] + h @ params["w_hh"] + params["b"][0]
        i = jax.nn.sigmoid(g[:, 0 * H:1 * H])
        f = jax.nn.sigmoid(g[:, 1 * H:2 * H])
        gg = jnp.tanh(g[:, 2 * H:3 * H])
        o = jax.nn.sigmoid(g[:, 3 * H:4 * H])
        c_new = f * c + i * gg
        return o * jnp.tanh(c_new), c_new

    feat_proj = input_feature @ params["w_feat"]
    h = jnp.zeros((B, H), jnp.float32)
    c = jnp.zeros((B, H), jnp.float32)
    h, c = cell(feat_proj, h, c)
    outs = []
    for t in range(T):
        x = params["embedding"][input_sentence[:, t]]
        h, c = cell(x, h, c)
        outs.append(h @ params["w_out"] + params["b_out"][0])
    return jnp.stack(outs, axis=1)


# ----------------------------------- main -------------------------------------


def make_params(key, feat_dim, embed, hidden, vocab):
    ks = jax.random.split(key, 7)
    s = 0.1
    return {
        "w_feat": s * jax.random.normal(ks[0], (feat_dim, embed), jnp.float32),
        "embedding": s * jax.random.normal(ks[1], (vocab, embed), jnp.float32),
        "w_ih": s * jax.random.normal(ks[2], (embed, 4 * hidden), jnp.float32),
        "w_hh": s * jax.random.normal(ks[3], (hidden, 4 * hidden), jnp.float32),
        "b": s * jax.random.normal(ks[4], (1, 4 * hidden), jnp.float32),
        "w_out": s * jax.random.normal(ks[5], (hidden, vocab), jnp.float32),
        "b_out": s * jax.random.normal(ks[6], (1, vocab), jnp.float32),
    }


if __name__ == "__main__":
    B, T = 2, 8
    FEAT, EMBED, HIDDEN, VOCAB = 32, 32, 32, 32

    key = jax.random.PRNGKey(0)
    k_param, k_feat, k_sent = jax.random.split(key, 3)

    params = make_params(k_param, FEAT, EMBED, HIDDEN, VOCAB)
    input_feature = jax.random.normal(k_feat, (B, FEAT), jnp.float32)
    input_sentence = jax.random.randint(k_sent, (B, T), 0, VOCAB, jnp.int32)

    # one-time parameter packing (cached across forward calls)
    prep = prepare_lm_params(params)
    prep = jax.tree_util.tree_map(
        lambda x: jax.block_until_ready(x) if isinstance(x, jax.Array) else x, prep)

    logits = language_model_forward(prep, input_feature, input_sentence)
    logits = jax.block_until_ready(logits)

    ref = language_model_reference(params, input_feature, input_sentence)
    ref = jax.block_until_ready(ref)

    assert logits.shape == (B, T, VOCAB)
    np.testing.assert_allclose(np.asarray(logits), np.asarray(ref),
                               rtol=2e-2, atol=2e-2)
    print("KERNEL_OK")
</pallas_src>

<mosaic_0001>
module attributes {stable_mosaic.version = 11 : i64} {
  func.func @_lstm_recurrence_kernel(%arg0: i32, %arg1: memref<8x8x512xf32, #tpu.memory_space<vmem>>, %arg2: memref<8x512xf32, #tpu.memory_space<vmem>>, %arg3: memref<128x512xbf16, #tpu.memory_space<vmem>>, %arg4: memref<1x512xf32, #tpu.memory_space<vmem>>, %arg5: memref<8x8x128xbf16, #tpu.memory_space<vmem>>) attributes {dimension_semantics = [#tpu.dimension_semantics<parallel>], iteration_bounds = array<i64: 1>, scalar_prefetch = 0 : i64, scratch_operands = 0 : i64, tpu.core_type = #tpu.core_type<tc>, window_params = [{transform_indices = @transform_0, window_bounds = array<i64: 8, 8, 512>}, {transform_indices = @transform_1, window_bounds = array<i64: 8, 512>}, {pipeline_mode = #tpu.pipeline_mode<synchronous>, transform_indices = @transform_2, window_bounds = array<i64: 128, 512>}, {pipeline_mode = #tpu.pipeline_mode<synchronous>, transform_indices = @transform_3, window_bounds = array<i64: 1, 512>}, {transform_indices = @transform_4, window_bounds = array<i64: 8, 8, 128>}]} {
    %c0 = arith.constant 0 : index
    %c0_0 = arith.constant 0 : index
    %0 = vector.load %arg3[%c0, %c0_0] : memref<128x512xbf16, #tpu.memory_space<vmem>>, vector<128x512xbf16>
    %c0_1 = arith.constant 0 : index
    %c0_2 = arith.constant 0 : index
    %1 = vector.load %arg4[%c0_1, %c0_2] : memref<1x512xf32, #tpu.memory_space<vmem>>, vector<1x512xf32>
    %2 = vector.shape_cast %1 : vector<1x512xf32> to vector<1x512xf32>
    %3 = vector.broadcast %2 : vector<1x512xf32> to vector<8x512xf32>
    %cst = arith.constant 0.000000e+00 : f32
    %4 = vector.broadcast %cst : f32 to vector<8x128xf32>
    %c0_3 = arith.constant 0 : index
    %c0_4 = arith.constant 0 : index
    %5 = vector.load %arg2[%c0_3, %c0_4] : memref<8x512xf32, #tpu.memory_space<vmem>>, vector<8x512xf32>
    %6 = arith.addf %5, %3 : vector<8x512xf32>
    %7 = arith.truncf %4 : vector<8x128xf32> to vector<8x128xbf16>
    %cst_5 = arith.constant dense<0.000000e+00> : vector<8x512xf32>
    %8 = tpu.matmul %7, %0, %cst_5 {dimension_numbers = #tpu.dot_dimension_numbers<[1], [0], [0], [1], [0, 0, 1, 1], [], []>} : vector<8x128xbf16>, vector<128x512xbf16>, vector<8x512xf32> -> vector<8x512xf32>
    %9 = arith.addf %6, %8 : vector<8x512xf32>
    %10 = vector.extract_strided_slice %9 {offsets = [0, 0], sizes = [8, 128], strides = [1, 1]} : vector<8x512xf32> to vector<8x128xf32>
    %11 = arith.negf %10 : vector<8x128xf32>
    %12 = math.exp %11 : vector<8x128xf32>
    %cst_6 = arith.constant 1.000000e+00 : f32
    %13 = vector.broadcast %cst_6 : f32 to vector<8x128xf32>
    %14 = arith.addf %13, %12 : vector<8x128xf32>
    %15 = arith.divf %13, %14 : vector<8x128xf32>
    %16 = vector.extract_strided_slice %9 {offsets = [0, 128], sizes = [8, 128], strides = [1, 1]} : vector<8x512xf32> to vector<8x128xf32>
    %17 = arith.negf %16 : vector<8x128xf32>
    %18 = math.exp %17 : vector<8x128xf32>
    %cst_7 = arith.constant 1.000000e+00 : f32
    %19 = vector.broadcast %cst_7 : f32 to vector<8x128xf32>
    %20 = arith.addf %19, %18 : vector<8x128xf32>
    %21 = arith.divf %19, %20 : vector<8x128xf32>
    %22 = vector.extract_strided_slice %9 {offsets = [0, 256], sizes = [8, 128], strides = [1, 1]} : vector<8x512xf32> to vector<8x128xf32>
    %23 = math.tanh %22 : vector<8x128xf32>
    %24 = vector.extract_strided_slice %9 {offsets = [0, 384], sizes = [8, 128], strides = [1, 1]} : vector<8x512xf32> to vector<8x128xf32>
    %25 = arith.negf %24 : vector<8x128xf32>
    %26 = math.exp %25 : vector<8x128xf32>
    %cst_8 = arith.constant 1.000000e+00 : f32
    %27 = vector.broadcast %cst_8 : f32 to vector<8x128xf32>
    %28 = arith.addf %27, %26 : vector<8x128xf32>
    %29 = arith.divf %27, %28 : vector<8x128xf32>
    %30 = arith.mulf %21, %4 : vector<8x128xf32>
    %31 = arith.mulf %15, %23 : vector<8x128xf32>
    %32 = arith.addf %30, %31 : vector<8x128xf32>
    %33 = math.tanh %32 : vector<8x128xf32>
    %34 = arith.mulf %29, %33 : vector<8x128xf32>
    %c0_i32 = arith.constant 0 : i32
    %35 = arith.index_cast %c0_i32 : i32 to index
    %c0_9 = arith.constant 0 : index
    %c0_10 = arith.constant 0 : index
    %36 = vector.load %arg1[%35, %c0_9, %c0_10] : memref<8x8x512xf32, #tpu.memory_space<vmem>>, vector<1x8x512xf32>
    %37 = vector.shape_cast %36 : vector<1x8x512xf32> to vector<8x512xf32>
    %38 = arith.addf %37, %3 : vector<8x512xf32>
    %39 = arith.truncf %34 : vector<8x128xf32> to vector<8x128xbf16>
    %cst_11 = arith.constant dense<0.000000e+00> : vector<8x512xf32>
    %40 = tpu.matmul %39, %0, %cst_11 {dimension_numbers = #tpu.dot_dimension_numbers<[1], [0], [0], [1], [0, 0, 1, 1], [], []>} : vector<8x128xbf16>, vector<128x512xbf16>, vector<8x512xf32> -> vector<8x512xf32>
    %41 = arith.addf %38, %40 : vector<8x512xf32>
    %42 = vector.extract_strided_slice %41 {offsets = [0, 0], sizes = [8, 128], strides = [1, 1]} : vector<8x512xf32> to vector<8x128xf32>
    %43 = arith.negf %42 : vector<8x128xf32>
    %44 = math.exp %43 : vector<8x128xf32>
    %cst_12 = arith.constant 1.000000e+00 : f32
    %45 = vector.broadcast %cst_12 : f32 to vector<8x128xf32>
    %46 = arith.addf %45, %44 : vector<8x128xf32>
    %47 = arith.divf %45, %46 : vector<8x128xf32>
    %48 = vector.extract_strided_slice %41 {offsets = [0, 128], sizes = [8, 128], strides = [1, 1]} : vector<8x512xf32> to vector<8x128xf32>
    %49 = arith.negf %48 : vector<8x128xf32>
    %50 = math.exp %49 : vector<8x128xf32>
    %cst_13 = arith.constant 1.000000e+00 : f32
    %51 = vector.broadcast %cst_13 : f32 to vector<8x128xf32>
    %52 = arith.addf %51, %50 : vector<8x128xf32>
    %53 = arith.divf %51, %52 : vector<8x128xf32>
    %54 = vector.extract_strided_slice %41 {offsets = [0, 256], sizes = [8, 128], strides = [1, 1]} : vector<8x512xf32> to vector<8x128xf32>
    %55 = math.tanh %54 : vector<8x128xf32>
    %56 = vector.extract_strided_slice %41 {offsets = [0, 384], sizes = [8, 128], strides = [1, 1]} : vector<8x512xf32> to vector<8x128xf32>
    %57 = arith.negf %56 : vector<8x128xf32>
    %58 = math.exp %57 : vector<8x128xf32>
    %cst_14 = arith.constant 1.000000e+00 : f32
    %59 = vector.broadcast %cst_14 : f32 to vector<8x128xf32>
    %60 = arith.addf %59, %58 : vector<8x128xf32>
    %61 = arith.divf %59, %60 : vector<8x128xf32>
    %62 = arith.mulf %53, %32 : vector<8x128xf32>
    %63 = arith.mulf %47, %55 : vector<8x128xf32>
    %64 = arith.addf %62, %63 : vector<8x128xf32>
    %65 = math.tanh %64 : vector<8x128xf32>
    %66 = arith.mulf %61, %65 : vector<8x128xf32>
    %67 = arith.truncf %66 : vector<8x128xf32> to vector<8x128xbf16>
    %68 = arith.index_cast %c0_i32 : i32 to index
    %c0_15 = arith.constant 0 : index
    %c0_16 = arith.constant 0 : index
    %69 = vector.load %arg5[%68, %c0_15, %c0_16] : memref<8x8x128xbf16, #tpu.memory_space<vmem>>, vector<1x8x128xbf16>
    %70 = vector.shape_cast %69 : vector<1x8x128xbf16> to vector<8x128xbf16>
    %71 = vector.shape_cast %67 : vector<8x128xbf16> to vector<1x8x128xbf16>
    tpu.vector_store %arg5[%68, %c0_15, %c0_16], %71 {strides = array<i32>} : memref<8x8x128xbf16, #tpu.memory_space<vmem>>, vector<1x8x128xbf16>,
    %c1_i32 = arith.constant 1 : i32
    %72 = arith.index_cast %c1_i32 : i32 to index
    %c0_17 = arith.constant 0 : index
    %c0_18 = arith.constant 0 : index
    %73 = vector.load %arg1[%72, %c0_17, %c0_18] : memref<8x8x512xf32, #tpu.memory_space<vmem>>, vector<1x8x512xf32>
    %74 = vector.shape_cast %73 : vector<1x8x512xf32> to vector<8x512xf32>
    %75 = arith.addf %74, %3 : vector<8x512xf32>
    %76 = arith.truncf %66 : vector<8x128xf32> to vector<8x128xbf16>
    %cst_19 = arith.constant dense<0.000000e+00> : vector<8x512xf32>
    %77 = tpu.matmul %76, %0, %cst_19 {dimension_numbers = #tpu.dot_dimension_numbers<[1], [0], [0], [1], [0, 0, 1, 1], [], []>} : vector<8x128xbf16>, vector<128x512xbf16>, vector<8x512xf32> -> vector<8x512xf32>
    %78 = arith.addf %75, %77 : vector<8x512xf32>
    %79 = vector.extract_strided_slice %78 {offsets = [0, 0], sizes = [8, 128], strides = [1, 1]} : vector<8x512xf32> to vector<8x128xf32>
    %80 = arith.negf %79 : vector<8x128xf32>
    %81 = math.exp %80 : vector<8x128xf32>
    %cst_20 = arith.constant 1.000000e+00 : f32
    %82 = vector.broadcast %cst_20 : f32 to vector<8x128xf32>
    %83 = arith.addf %82, %81 : vector<8x128xf32>
    %84 = arith.divf %82, %83 : vector<8x128xf32>
    %85 = vector.extract_strided_slice %78 {offsets = [0, 128], sizes = [8, 128], strides = [1, 1]} : vector<8x512xf32> to vector<8x128xf32>
    %86 = arith.negf %85 : vector<8x128xf32>
    %87 = math.exp %86 : vector<8x128xf32>
    %cst_21 = arith.constant 1.000000e+00 : f32
    %88 = vector.broadcast %cst_21 : f32 to vector<8x128xf32>
    %89 = arith.addf %88, %87 : vector<8x128xf32>
    %90 = arith.divf %88, %89 : vector<8x128xf32>
    %91 = vector.extract_strided_slice %78 {offsets = [0, 256], sizes = [8, 128], strides = [1, 1]} : vector<8x512xf32> to vector<8x128xf32>
    %92 = math.tanh %91 : vector<8x128xf32>
    %93 = vector.extract_strided_slice %78 {offsets = [0, 384], sizes = [8, 128], strides = [1, 1]} : vector<8x512xf32> to vector<8x128xf32>
    %94 = arith.negf %93 : vector<8x128xf32>
    %95 = math.exp %94 : vector<8x128xf32>
    %cst_22 = arith.constant 1.000000e+00 : f32
    %96 = vector.broadcast %cst_22 : f32 to vector<8x128xf32>
    %97 = arith.addf %96, %95 : vector<8x128xf32>
    %98 = arith.divf %96, %97 : vector<8x128xf32>
    %99 = arith.mulf %90, %64 : vector<8x128xf32>
    %100 = arith.mulf %84, %92 : vector<8x128xf32>
    %101 = arith.addf %99, %100 : vector<8x128xf32>
    %102 = math.tanh %101 : vector<8x128xf32>
    %103 = arith.mulf %98, %102 : vector<8x128xf32>
    %104 = arith.truncf %103 : vector<8x128xf32> to vector<8x128xbf16>
    %105 = arith.index_cast %c1_i32 : i32 to index
    %c0_23 = arith.constant 0 : index
    %c0_24 = arith.constant 0 : index
    %106 = vector.load %arg5[%105, %c0_23, %c0_24] : memref<8x8x128xbf16, #tpu.memory_space<vmem>>, vector<1x8x128xbf16>
    %107 = vector.shape_cast %106 : vector<1x8x128xbf16> to vector<8x128xbf16>
    %108 = vector.shape_cast %104 : vector<8x128xbf16> to vector<1x8x128xbf16>
    tpu.vector_store %arg5[%105, %c0_23, %c0_24], %108 {strides = array<i32>} : memref<8x8x128xbf16, #tpu.memory_space<vmem>>, vector<1x8x128xbf16>,
    %c2_i32 = arith.constant 2 : i32
    %109 = arith.index_cast %c2_i32 : i32 to index
    %c0_25 = arith.constant 0 : index
    %c0_26 = arith.constant 0 : index
    %110 = vector.load %arg1[%109, %c0_25, %c0_26] : memref<8x8x512xf32, #tpu.memory_space<vmem>>, vector<1x8x512xf32>
    %111 = vector.shape_cast %110 : vector<1x8x512xf32> to vector<8x512xf32>
    %112 = arith.addf %111, %3 : vector<8x512xf32>
    %113 = arith.truncf %103 : vector<8x128xf32> to vector<8x128xbf16>
    %cst_27 = arith.constant dense<0.000000e+00> : vector<8x512xf32>
    %114 = tpu.matmul %113, %0, %cst_27 {dimension_numbers = #tpu.dot_dimension_numbers<[1], [0], [0], [1], [0, 0, 1, 1], [], []>} : vector<8x128xbf16>, vector<128x512xbf16>, vector<8x512xf32> -> vector<8x512xf32>
    %115 = arith.addf %112, %114 : vector<8x512xf32>
    %116 = vector.extract_strided_slice %115 {offsets = [0, 0], sizes = [8, 128], strides = [1, 1]} : vector<8x512xf32> to vector<8x128xf32>
    %117 = arith.negf %116 : vector<8x128xf32>
    %118 = math.exp %117 : vector<8x128xf32>
    %cst_28 = arith.constant 1.000000e+00 : f32
    %119 = vector.broadcast %cst_28 : f32 to vector<8x128xf32>
    %120 = arith.addf %119, %118 : vector<8x128xf32>
    %121 = arith.divf %119, %120 : vector<8x128xf32>
    %122 = vector.extract_strided_slice %115 {offsets = [0, 128], sizes = [8, 128], strides = [1, 1]} : vector<8x512xf32> to vector<8x128xf32>
    %123 = arith.negf %122 : vector<8x128xf32>
    %124 = math.exp %123 : vector<8x128xf32>
    %cst_29 = arith.constant 1.000000e+00 : f32
    %125 = vector.broadcast %cst_29 : f32 to vector<8x128xf32>
    %126 = arith.addf %125, %124 : vector<8x128xf32>
    %127 = arith.divf %125, %126 : vector<8x128xf32>
    %128 = vector.extract_strided_slice %115 {offsets = [0, 256], sizes = [8, 128], strides = [1, 1]} : vector<8x512xf32> to vector<8x128xf32>
    %129 = math.tanh %128 : vector<8x128xf32>
    %130 = vector.extract_strided_slice %115 {offsets = [0, 384], sizes = [8, 128], strides = [1, 1]} : vector<8x512xf32> to vector<8x128xf32>
    %131 = arith.negf %130 : vector<8x128xf32>
    %132 = math.exp %131 : vector<8x128xf32>
    %cst_30 = arith.constant 1.000000e+00 : f32
    %133 = vector.broadcast %cst_30 : f32 to vector<8x128xf32>
    %134 = arith.addf %133, %132 : vector<8x128xf32>
    %135 = arith.divf %133, %134 : vector<8x128xf32>
    %136 = arith.mulf %127, %101 : vector<8x128xf32>
    %137 = arith.mulf %121, %129 : vector<8x128xf32>
    %138 = arith.addf %136, %137 : vector<8x128xf32>
    %139 = math.tanh %138 : vector<8x128xf32>
    %140 = arith.mulf %135, %139 : vector<8x128xf32>
    %141 = arith.truncf %140 : vector<8x128xf32> to vector<8x128xbf16>
    %142 = arith.index_cast %c2_i32 : i32 to index
    %c0_31 = arith.constant 0 : index
    %c0_32 = arith.constant 0 : index
    %143 = vector.load %arg5[%142, %c0_31, %c0_32] : memref<8x8x128xbf16, #tpu.memory_space<vmem>>, vector<1x8x128xbf16>
    %144 = vector.shape_cast %143 : vector<1x8x128xbf16> to vector<8x128xbf16>
    %145 = vector.shape_cast %141 : vector<8x128xbf16> to vector<1x8x128xbf16>
    tpu.vector_store %arg5[%142, %c0_31, %c0_32], %145 {strides = array<i32>} : memref<8x8x128xbf16, #tpu.memory_space<vmem>>, vector<1x8x128xbf16>,
    %c3_i32 = arith.constant 3 : i32
    %146 = arith.index_cast %c3_i32 : i32 to index
    %c0_33 = arith.constant 0 : index
    %c0_34 = arith.constant 0 : index
    %147 = vector.load %arg1[%146, %c0_33, %c0_34] : memref<8x8x512xf32, #tpu.memory_space<vmem>>, vector<1x8x512xf32>
    %148 = vector.shape_cast %147 : vector<1x8x512xf32> to vector<8x512xf32>
    %149 = arith.addf %148, %3 : vector<8x512xf32>
    %150 = arith.truncf %140 : vector<8x128xf32> to vector<8x128xbf16>
    %cst_35 = arith.constant dense<0.000000e+00> : vector<8x512xf32>
    %151 = tpu.matmul %150, %0, %cst_35 {dimension_numbers = #tpu.dot_dimension_numbers<[1], [0], [0], [1], [0, 0, 1, 1], [], []>} : vector<8x128xbf16>, vector<128x512xbf16>, vector<8x512xf32> -> vector<8x512xf32>
    %152 = arith.addf %149, %151 : vector<8x512xf32>
    %153 = vector.extract_strided_slice %152 {offsets = [0, 0], sizes = [8, 128], strides = [1, 1]} : vector<8x512xf32> to vector<8x128xf32>
    %154 = arith.negf %153 : vector<8x128xf32>
    %155 = math.exp %154 : vector<8x128xf32>
    %cst_36 = arith.constant 1.000000e+00 : f32
    %156 = vector.broadcast %cst_36 : f32 to vector<8x128xf32>
    %157 = arith.addf %156, %155 : vector<8x128xf32>
    %158 = arith.divf %156, %157 : vector<8x128xf32>
    %159 = vector.extract_strided_slice %152 {offsets = [0, 128], sizes = [8, 128], strides = [1, 1]} : vector<8x512xf32> to vector<8x128xf32>
    %160 = arith.negf %159 : vector<8x128xf32>
    %161 = math.exp %160 : vector<8x128xf32>
    %cst_37 = arith.constant 1.000000e+00 : f32
    %162 = vector.broadcast %cst_37 : f32 to vector<8x128xf32>
    %163 = arith.addf %162, %161 : vector<8x128xf32>
    %164 = arith.divf %162, %163 : vector<8x128xf32>
    %165 = vector.extract_strided_slice %152 {offsets = [0, 256], sizes = [8, 128], strides = [1, 1]} : vector<8x512xf32> to vector<8x128xf32>
    %166 = math.tanh %165 : vector<8x128xf32>
    %167 = vector.extract_strided_slice %152 {offsets = [0, 384], sizes = [8, 128], strides = [1, 1]} : vector<8x512xf32> to vector<8x128xf32>
    %168 = arith.negf %167 : vector<8x128xf32>
    %169 = math.exp %168 : vector<8x128xf32>
    %cst_38 = arith.constant 1.000000e+00 : f32
    %170 = vector.broadcast %cst_38 : f32 to vector<8x128xf32>
    %171 = arith.addf %170, %169 : vector<8x128xf32>
    %172 = arith.divf %170, %171 : vector<8x128xf32>
    %173 = arith.mulf %164, %138 : vector<8x128xf32>
    %174 = arith.mulf %158, %166 : vector<8x128xf32>
    %175 = arith.addf %173, %174 : vector<8x128xf32>
    %176 = math.tanh %175 : vector<8x128xf32>
    %177 = arith.mulf %172, %176 : vector<8x128xf32>
    %178 = arith.truncf %177 : vector<8x128xf32> to vector<8x128xbf16>
    %179 = arith.index_cast %c3_i32 : i32 to index
    %c0_39 = arith.constant 0 : index
    %c0_40 = arith.constant 0 : index
    %180 = vector.load %arg5[%179, %c0_39, %c0_40] : memref<8x8x128xbf16, #tpu.memory_space<vmem>>, vector<1x8x128xbf16>
    %181 = vector.shape_cast %180 : vector<1x8x128xbf16> to vector<8x128xbf16>
    %182 = vector.shape_cast %178 : vector<8x128xbf16> to vector<1x8x128xbf16>
    tpu.vector_store %arg5[%179, %c0_39, %c0_40], %182 {strides = array<i32>} : memref<8x8x128xbf16, #tpu.memory_space<vmem>>, vector<1x8x128xbf16>,
    %c4_i32 = arith.constant 4 : i32
    %183 = arith.index_cast %c4_i32 : i32 to index
    %c0_41 = arith.constant 0 : index
    %c0_42 = arith.constant 0 : index
    %184 = vector.load %arg1[%183, %c0_41, %c0_42] : memref<8x8x512xf32, #tpu.memory_space<vmem>>, vector<1x8x512xf32>
    %185 = vector.shape_cast %184 : vector<1x8x512xf32> to vector<8x512xf32>
    %186 = arith.addf %185, %3 : vector<8x512xf32>
    %187 = arith.truncf %177 : vector<8x128xf32> to vector<8x128xbf16>
    %cst_43 = arith.constant dense<0.000000e+00> : vector<8x512xf32>
    %188 = tpu.matmul %187, %0, %cst_43 {dimension_numbers = #tpu.dot_dimension_numbers<[1], [0], [0], [1], [0, 0, 1, 1], [], []>} : vector<8x128xbf16>, vector<128x512xbf16>, vector<8x512xf32> -> vector<8x512xf32>
    %189 = arith.addf %186, %188 : vector<8x512xf32>
    %190 = vector.extract_strided_slice %189 {offsets = [0, 0], sizes = [8, 128], strides = [1, 1]} : vector<8x512xf32> to vector<8x128xf32>
    %191 = arith.negf %190 : vector<8x128xf32>
    %192 = math.exp %191 : vector<8x128xf32>
    %cst_44 = arith.constant 1.000000e+00 : f32
    %193 = vector.broadcast %cst_44 : f32 to vector<8x128xf32>
    %194 = arith.addf %193, %192 : vector<8x128xf32>
    %195 = arith.divf %193, %194 : vector<8x128xf32>
    %196 = vector.extract_strided_slice %189 {offsets = [0, 128], sizes = [8, 128], strides = [1, 1]} : vector<8x512xf32> to vector<8x128xf32>
    %197 = arith.negf %196 : vector<8x128xf32>
    %198 = math.exp %197 : vector<8x128xf32>
    %cst_45 = arith.constant 1.000000e+00 : f32
    %199 = vector.broadcast %cst_45 : f32 to vector<8x128xf32>
    %200 = arith.addf %199, %198 : vector<8x128xf32>
    %201 = arith.divf %199, %200 : vector<8x128xf32>
    %202 = vector.extract_strided_slice %189 {offsets = [0, 256], sizes = [8, 128], strides = [1, 1]} : vector<8x512xf32> to vector<8x128xf32>
    %203 = math.tanh %202 : vector<8x128xf32>
    %204 = vector.extract_strided_slice %189 {offsets = [0, 384], sizes = [8, 128], strides = [1, 1]} : vector<8x512xf32> to vector<8x128xf32>
    %205 = arith.negf %204 : vector<8x128xf32>
    %206 = math.exp %205 : vector<8x128xf32>
    %cst_46 = arith.constant 1.000000e+00 : f32
    %207 = vector.broadcast %cst_46 : f32 to vector<8x128xf32>
    %208 = arith.addf %207, %206 : vector<8x128xf32>
    %209 = arith.divf %207, %208 : vector<8x128xf32>
    %210 = arith.mulf %201, %175 : vector<8x128xf32>
    %211 = arith.mulf %195, %203 : vector<8x128xf32>
    %212 = arith.addf %210, %211 : vector<8x128xf32>
    %213 = math.tanh %212 : vector<8x128xf32>
    %214 = arith.mulf %209, %213 : vector<8x128xf32>
    %215 = arith.truncf %214 : vector<8x128xf32> to vector<8x128xbf16>
    %216 = arith.index_cast %c4_i32 : i32 to index
    %c0_47 = arith.constant 0 : index
    %c0_48 = arith.constant 0 : index
    %217 = vector.load %arg5[%216, %c0_47, %c0_48] : memref<8x8x128xbf16, #tpu.memory_space<vmem>>, vector<1x8x128xbf16>
    %218 = vector.shape_cast %217 : vector<1x8x128xbf16> to vector<8x128xbf16>
    %219 = vector.shape_cast %215 : vector<8x128xbf16> to vector<1x8x128xbf16>
    tpu.vector_store %arg5[%216, %c0_47, %c0_48], %219 {strides = array<i32>} : memref<8x8x128xbf16, #tpu.memory_space<vmem>>, vector<1x8x128xbf16>,
    %c5_i32 = arith.constant 5 : i32
    %220 = arith.index_cast %c5_i32 : i32 to index
    %c0_49 = arith.constant 0 : index
    %c0_50 = arith.constant 0 : index
    %221 = vector.load %arg1[%220, %c0_49, %c0_50] : memref<8x8x512xf32, #tpu.memory_space<vmem>>, vector<1x8x512xf32>
    %222 = vector.shape_cast %221 : vector<1x8x512xf32> to vector<8x512xf32>
    %223 = arith.addf %222, %3 : vector<8x512xf32>
    %224 = arith.truncf %214 : vector<8x128xf32> to vector<8x128xbf16>
    %cst_51 = arith.constant dense<0.000000e+00> : vector<8x512xf32>
    %225 = tpu.matmul %224, %0, %cst_51 {dimension_numbers = #tpu.dot_dimension_numbers<[1], [0], [0], [1], [0, 0, 1, 1], [], []>} : vector<8x128xbf16>, vector<128x512xbf16>, vector<8x512xf32> -> vector<8x512xf32>
    %226 = arith.addf %223, %225 : vector<8x512xf32>
    %227 = vector.extract_strided_slice %226 {offsets = [0, 0], sizes = [8, 128], strides = [1, 1]} : vector<8x512xf32> to vector<8x128xf32>
    %228 = arith.negf %227 : vector<8x128xf32>
    %229 = math.exp %228 : vector<8x128xf32>
    %cst_52 = arith.constant 1.000000e+00 : f32
    %230 = vector.broadcast %cst_52 : f32 to vector<8x128xf32>
    %231 = arith.addf %230, %229 : vector<8x128xf32>
    %232 = arith.divf %230, %231 : vector<8x128xf32>
    %233 = vector.extract_strided_slice %226 {offsets = [0, 128], sizes = [8, 128], strides = [1, 1]} : vector<8x512xf32> to vector<8x128xf32>
    %234 = arith.negf %233 : vector<8x128xf32>
    %235 = math.exp %234 : vector<8x128xf32>
    %cst_53 = arith.constant 1.000000e+00 : f32
    %236 = vector.broadcast %cst_53 : f32 to vector<8x128xf32>
    %237 = arith.addf %236, %235 : vector<8x128xf32>
    %238 = arith.divf %236, %237 : vector<8x128xf32>
    %239 = vector.extract_strided_slice %226 {offsets = [0, 256], sizes = [8, 128], strides = [1, 1]} : vector<8x512xf32> to vector<8x128xf32>
    %240 = math.tanh %239 : vector<8x128xf32>
    %241 = vector.extract_strided_slice %226 {offsets = [0, 384], sizes = [8, 128], strides = [1, 1]} : vector<8x512xf32> to vector<8x128xf32>
    %242 = arith.negf %241 : vector<8x128xf32>
    %243 = math.exp %242 : vector<8x128xf32>
    %cst_54 = arith.constant 1.000000e+00 : f32
    %244 = vector.broadcast %cst_54 : f32 to vector<8x128xf32>
    %245 = arith.addf %244, %243 : vector<8x128xf32>
    %246 = arith.divf %244, %245 : vector<8x128xf32>
    %247 = arith.mulf %238, %212 : vector<8x128xf32>
    %248 = arith.mulf %232, %240 : vector<8x128xf32>
    %249 = arith.addf %247, %248 : vector<8x128xf32>
    %250 = math.tanh %249 : vector<8x128xf32>
    %251 = arith.mulf %246, %250 : vector<8x128xf32>
    %252 = arith.truncf %251 : vector<8x128xf32> to vector<8x128xbf16>
    %253 = arith.index_cast %c5_i32 : i32 to index
    %c0_55 = arith.constant 0 : index
    %c0_56 = arith.constant 0 : index
    %254 = vector.load %arg5[%253, %c0_55, %c0_56] : memref<8x8x128xbf16, #tpu.memory_space<vmem>>, vector<1x8x128xbf16>
    %255 = vector.shape_cast %254 : vector<1x8x128xbf16> to vector<8x128xbf16>
    %256 = vector.shape_cast %252 : vector<8x128xbf16> to vector<1x8x128xbf16>
    tpu.vector_store %arg5[%253, %c0_55, %c0_56], %256 {strides = array<i32>} : memref<8x8x128xbf16, #tpu.memory_space<vmem>>, vector<1x8x128xbf16>,
    %c6_i32 = arith.constant 6 : i32
    %257 = arith.index_cast %c6_i32 : i32 to index
    %c0_57 = arith.constant 0 : index
    %c0_58 = arith.constant 0 : index
    %258 = vector.load %arg1[%257, %c0_57, %c0_58] : memref<8x8x512xf32, #tpu.memory_space<vmem>>, vector<1x8x512xf32>
    %259 = vector.shape_cast %258 : vector<1x8x512xf32> to vector<8x512xf32>
    %260 = arith.addf %259, %3 : vector<8x512xf32>
    %261 = arith.truncf %251 : vector<8x128xf32> to vector<8x128xbf16>
    %cst_59 = arith.constant dense<0.000000e+00> : vector<8x512xf32>
    %262 = tpu.matmul %261, %0, %cst_59 {dimension_numbers = #tpu.dot_dimension_numbers<[1], [0], [0], [1], [0, 0, 1, 1], [], []>} : vector<8x128xbf16>, vector<128x512xbf16>, vector<8x512xf32> -> vector<8x512xf32>
    %263 = arith.addf %260, %262 : vector<8x512xf32>
    %264 = vector.extract_strided_slice %263 {offsets = [0, 0], sizes = [8, 128], strides = [1, 1]} : vector<8x512xf32> to vector<8x128xf32>
    %265 = arith.negf %264 : vector<8x128xf32>
    %266 = math.exp %265 : vector<8x128xf32>
    %cst_60 = arith.constant 1.000000e+00 : f32
    %267 = vector.broadcast %cst_60 : f32 to vector<8x128xf32>
    %268 = arith.addf %267, %266 : vector<8x128xf32>
    %269 = arith.divf %267, %268 : vector<8x128xf32>
    %270 = vector.extract_strided_slice %263 {offsets = [0, 128], sizes = [8, 128], strides = [1, 1]} : vector<8x512xf32> to vector<8x128xf32>
    %271 = arith.negf %270 : vector<8x128xf32>
    %272 = math.exp %271 : vector<8x128xf32>
    %cst_61 = arith.constant 1.000000e+00 : f32
    %273 = vector.broadcast %cst_61 : f32 to vector<8x128xf32>
    %274 = arith.addf %273, %272 : vector<8x128xf32>
    %275 = arith.divf %273, %274 : vector<8x128xf32>
    %276 = vector.extract_strided_slice %263 {offsets = [0, 256], sizes = [8, 128], strides = [1, 1]} : vector<8x512xf32> to vector<8x128xf32>
    %277 = math.tanh %276 : vector<8x128xf32>
    %278 = vector.extract_strided_slice %263 {offsets = [0, 384], sizes = [8, 128], strides = [1, 1]} : vector<8x512xf32> to vector<8x128xf32>
    %279 = arith.negf %278 : vector<8x128xf32>
    %280 = math.exp %279 : vector<8x128xf32>
    %cst_62 = arith.constant 1.000000e+00 : f32
    %281 = vector.broadcast %cst_62 : f32 to vector<8x128xf32>
    %282 = arith.addf %281, %280 : vector<8x128xf32>
    %283 = arith.divf %281, %282 : vector<8x128xf32>
    %284 = arith.mulf %275, %249 : vector<8x128xf32>
    %285 = arith.mulf %269, %277 : vector<8x128xf32>
    %286 = arith.addf %284, %285 : vector<8x128xf32>
    %287 = math.tanh %286 : vector<8x128xf32>
    %288 = arith.mulf %283, %287 : vector<8x128xf32>
    %289 = arith.truncf %288 : vector<8x128xf32> to vector<8x128xbf16>
    %290 = arith.index_cast %c6_i32 : i32 to index
    %c0_63 = arith.constant 0 : index
    %c0_64 = arith.constant 0 : index
    %291 = vector.load %arg5[%290, %c0_63, %c0_64] : memref<8x8x128xbf16, #tpu.memory_space<vmem>>, vector<1x8x128xbf16>
    %292 = vector.shape_cast %291 : vector<1x8x128xbf16> to vector<8x128xbf16>
    %293 = vector.shape_cast %289 : vector<8x128xbf16> to vector<1x8x128xbf16>
    tpu.vector_store %arg5[%290, %c0_63, %c0_64], %293 {strides = array<i32>} : memref<8x8x128xbf16, #tpu.memory_space<vmem>>, vector<1x8x128xbf16>,
    %c7_i32 = arith.constant 7 : i32
    %294 = arith.index_cast %c7_i32 : i32 to index
    %c0_65 = arith.constant 0 : index
    %c0_66 = arith.constant 0 : index
    %295 = vector.load %arg1[%294, %c0_65, %c0_66] : memref<8x8x512xf32, #tpu.memory_space<vmem>>, vector<1x8x512xf32>
    %296 = vector.shape_cast %295 : vector<1x8x512xf32> to vector<8x512xf32>
    %297 = arith.addf %296, %3 : vector<8x512xf32>
    %298 = arith.truncf %288 : vector<8x128xf32> to vector<8x128xbf16>
    %cst_67 = arith.constant dense<0.000000e+00> : vector<8x512xf32>
    %299 = tpu.matmul %298, %0, %cst_67 {dimension_numbers = #tpu.dot_dimension_numbers<[1], [0], [0], [1], [0, 0, 1, 1], [], []>} : vector<8x128xbf16>, vector<128x512xbf16>, vector<8x512xf32> -> vector<8x512xf32>
    %300 = arith.addf %297, %299 : vector<8x512xf32>
    %301 = vector.extract_strided_slice %300 {offsets = [0, 0], sizes = [8, 128], strides = [1, 1]} : vector<8x512xf32> to vector<8x128xf32>
    %302 = arith.negf %301 : vector<8x128xf32>
    %303 = math.exp %302 : vector<8x128xf32>
    %cst_68 = arith.constant 1.000000e+00 : f32
    %304 = vector.broadcast %cst_68 : f32 to vector<8x128xf32>
    %305 = arith.addf %304, %303 : vector<8x128xf32>
    %306 = arith.divf %304, %305 : vector<8x128xf32>
    %307 = vector.extract_strided_slice %300 {offsets = [0, 128], sizes = [8, 128], strides = [1, 1]} : vector<8x512xf32> to vector<8x128xf32>
    %308 = arith.negf %307 : vector<8x128xf32>
    %309 = math.exp %308 : vector<8x128xf32>
    %cst_69 = arith.constant 1.000000e+00 : f32
    %310 = vector.broadcast %cst_69 : f32 to vector<8x128xf32>
    %311 = arith.addf %310, %309 : vector<8x128xf32>
    %312 = arith.divf %310, %311 : vector<8x128xf32>
    %313 = vector.extract_strided_slice %300 {offsets = [0, 256], sizes = [8, 128], strides = [1, 1]} : vector<8x512xf32> to vector<8x128xf32>
    %314 = math.tanh %313 : vector<8x128xf32>
    %315 = vector.extract_strided_slice %300 {offsets = [0, 384], sizes = [8, 128], strides = [1, 1]} : vector<8x512xf32> to vector<8x128xf32>
    %316 = arith.negf %315 : vector<8x128xf32>
    %317 = math.exp %316 : vector<8x128xf32>
    %cst_70 = arith.constant 1.000000e+00 : f32
    %318 = vector.broadcast %cst_70 : f32 to vector<8x128xf32>
    %319 = arith.addf %318, %317 : vector<8x128xf32>
    %320 = arith.divf %318, %319 : vector<8x128xf32>
    %321 = arith.mulf %312, %286 : vector<8x128xf32>
    %322 = arith.mulf %306, %314 : vector<8x128xf32>
    %323 = arith.addf %321, %322 : vector<8x128xf32>
    %324 = math.tanh %323 : vector<8x128xf32>
    %325 = arith.mulf %320, %324 : vector<8x128xf32>
    %326 = arith.truncf %325 : vector<8x128xf32> to vector<8x128xbf16>
    %327 = arith.index_cast %c7_i32 : i32 to index
    %c0_71 = arith.constant 0 : index
    %c0_72 = arith.constant 0 : index
    %328 = vector.load %arg5[%327, %c0_71, %c0_72] : memref<8x8x128xbf16, #tpu.memory_space<vmem>>, vector<1x8x128xbf16>
    %329 = vector.shape_cast %328 : vector<1x8x128xbf16> to vector<8x128xbf16>
    %330 = vector.shape_cast %326 : vector<8x128xbf16> to vector<1x8x128xbf16>
    tpu.vector_store %arg5[%327, %c0_71, %c0_72], %330 {strides = array<i32>} : memref<8x8x128xbf16, #tpu.memory_space<vmem>>, vector<1x8x128xbf16>,
    %c8_i32 = arith.constant 8 : i32
    return
  }
  func.func @transform_0(%arg0: i32) -> (i32, i32, i32) {
    %c0_i32 = arith.constant 0 : i32
    %c0_i32_0 = arith.constant 0 : i32
    %c0_i32_1 = arith.constant 0 : i32
    return %c0_i32, %arg0, %c0_i32_0 : i32, i32, i32
  }
  func.func @transform_1(%arg0: i32) -> (i32, i32) {
    %c0_i32 = arith.constant 0 : i32
    %c0_i32_0 = arith.constant 0 : i32
    return %arg0, %c0_i32 : i32, i32
  }
  func.func @transform_2(%arg0: i32) -> (i32, i32) {
    %c0_i32 = arith.constant 0 : i32
    %c0_i32_0 = arith.constant 0 : i32
    %c0_i32_1 = arith.constant 0 : i32
    return %c0_i32, %c0_i32_0 : i32, i32
  }
  func.func @transform_3(%arg0: i32) -> (i32, i32) {
    %c0_i32 = arith.constant 0 : i32
    %c0_i32_0 = arith.constant 0 : i32
    %c0_i32_1 = arith.constant 0 : i32
    return %c0_i32, %c0_i32_0 : i32, i32
  }
  func.func @transform_4(%arg0: i32) -> (i32, i32, i32) {
    %c0_i32 = arith.constant 0 : i32
    %c0_i32_0 = arith.constant 0 : i32
    %c0_i32_1 = arith.constant 0 : i32
    return %c0_i32, %arg0, %c0_i32_0 : i32, i32, i32
  }
}

</mosaic_0001>

<bundles_post_ra>
// kernel: tpu_custom_call.1
= control target key start
LH: loop header
LB: loop body
LE: loop exit
PB: predicated region body
PF: predicated region fallthrough
CT: control target
= control target key end

     0   :  { %9 = vsyncpa [#allocation3], 0  ;;  %s2322_s0 = inlined_call_operand.hbm [shape: f32[8,8,512], index: 0, kind: input, shape index: {}]   ;;  %s2323_s1 = inlined_call_operand.hbm [shape: f32[8,512], index: 1, kind: input, shape index: {}]   ;;  %s2324_s2 = inlined_call_operand.hbm [shape: bf16[128,512], index: 2, kind: input, shape index: {}]   ;;  %s2325_s3 = inlined_call_operand.vmem [shape: f32[1,512], index: 3, kind: input, shape index: {}]   ;;  %s2326_s4 = inlined_call_operand.hbm [shape: bf16[8,8,128], index: 4, kind: output, shape index: {}]  }
   0x1   :  { %10 = vsyncpa [#allocation6], 0 }
   0x2   :  { %11 = vsyncpa [#allocation4], 0  ;;  %s1763_s15 = smov [#allocation5]   ;;  %s1764_s17 = smov [#allocation2]  }
   0x3   :  { %s30_s16 = sshll.u32 %s1763_s15, 4  ;;  %s17_s18 = sshll.u32 %s1764_s17, 4  ;;  %s31_s16 = int_to_ptr.vmem [resolvable:$true] %s30_s16  ;;  %s18_s18 = int_to_ptr.vmem [resolvable:$true] %s17_s18 }
   0x4   :  { %s1685_s19 = scalar_lea.vmem %s31_s16, 512  ;;  %p1690_p1 = scmp.lt.s32.totalorder %s31_s16, %s31_s16 }
   0x5   :  { %p1686_p0 = scmp.ne.s32.totalorder %s31_s16, %s1685_s19  ;;  %p1691_p2 = scmp.lt.s32.totalorder %s1685_s19, %s1685_s19 }
   0x7   :  { %p1692_p3 = por %p1691_p2, %p1690_p1 }
   0x9   :  { %p1693_p4 = pnand %p1692_p3, %p1686_p0 }
   0xb   :  { %1696 = shalt.err (!%p1693_p4)
}
   0xc   :  { %33 = dma.hbm_to_vmem [thread:$0]  %s2323_s1, 512, %s31_s16, [#allocation6]  }
   0xd   :  { %s1705_s22 = scalar_lea.vmem %s18_s18, 4096  ;;  %p1710_p6 = scmp.lt.s32.totalorder %s18_s18, %s18_s18 }
   0xe   :  { %p1706_p5 = scmp.ne.s32.totalorder %s18_s18, %s1705_s22  ;;  %p1711_p7 = scmp.lt.s32.totalorder %s1705_s22, %s1705_s22 }
  0x10   :  { %p1712_p8 = por %p1711_p7, %p1710_p6 }
  0x12   :  { %p1713_p9 = pnand %p1712_p8, %p1706_p5 }
  0x14   :  { %1716 = shalt.err (!%p1713_p9)
}
  0x15   :  { %s1765_s23 = smov 512   ;;  %s1766_s24 = smov 32  }
  0x16   :  { %23 = dma.hbm_to_vmem [thread:$0]  %s2322_s0, 4096, %s18_s18, [#allocation3], %s1765_s23, %s1765_s23, %s1766_s24  }
  0x17   :  { %s1767_s27 = smov [#allocation7]  }
  0x18   :  { %s39_s28 = sshll.u32 %s1767_s27, 4  ;;  %s40_s28 = int_to_ptr.vmem [resolvable:$true] %s39_s28 }
  0x19   :  { %s1725_s29 = scalar_lea.vmem %s40_s28, 4096  ;;  %p1730_p11 = scmp.lt.s32.totalorder %s40_s28, %s40_s28 }
  0x1a   :  { %p1726_p10 = scmp.ne.s32.totalorder %s40_s28, %s1725_s29  ;;  %p1731_p12 = scmp.lt.s32.totalorder %s1725_s29, %s1725_s29 }
  0x1c   :  { %p1732_p13 = por %p1731_p12, %p1730_p11 }
  0x1e   :  { %p1733_p0 = pnand %p1732_p13, %p1726_p10 }
  0x20   :  { %1736 = shalt.err (!%p1733_p0)
}
  0x21   :  { %s1768_s1 = smov 256   ;;  %s1769_s30 = smov 16  }
  0x22   :  { %45 = dma.hbm_to_vmem [thread:$0]  %s2324_s2, 4096, %s40_s28, [#allocation6], %s1768_s1, %s1768_s1, %s1769_s30  }
  0x23   :  { %1757 = dma.done.wait [#allocation3], 4096  }
  0x24   :  { %1758 = vsyncadd [#allocation3], 4294963200 }
  0x25   :  { %1759 = dma.done.wait [#allocation6], 4608  }
  0x26   :  { %1760 = vsyncadd [#allocation6], 4294962688  ;;  %v1770_v0 = vmov 0   ;;  %v1810_v1 = vld [vmem:[#allocation7 + $0xe4] ss:$16 sps:$4 sm:$0xff]   ;;  %v92_v33 = vlaneseq  ;;  %v113_v41 = vld [vmem:[#allocation5 + $0x8] sm:$0xff] }
  0x27   :  { %312 = vmatprep.mubr.bf16.mxu0 %v1770_v0  ;;  %353 = vmatprep.mubr.bf16.mxu1 %v1770_v0  ;;  %v1812_v2 = vld [vmem:[#allocation7 + $0xe0] ss:$16 sps:$4 sm:$0xff]   ;;  %v1815_v3 = vld [vmem:[#allocation7 + $0xc4] ss:$16 sps:$4 sm:$0xff]   ;;  %v1823_v6 = vld [vmem:[#allocation7 + $0xec] ss:$16 sps:$4 sm:$0xff]  }
  0x28   :  { %280 = vmatprep.subr.bf16.mxu0 %v1810_v1  ;;  %v1818_v4 = vld [vmem:[#allocation7 + $0xc0] ss:$16 sps:$4 sm:$0xff]   ;;  %v1821_v5 = vld [vmem:[#allocation7 + $0xa4] ss:$16 sps:$4 sm:$0xff]   ;;  %v1825_v7 = vld [vmem:[#allocation7 + $0xe8] ss:$16 sps:$4 sm:$0xff]   ;;  %321 = vmatprep.subr.bf16.mxu1 %v1823_v6 }
  0x29   :  { %281 = vmatpush1.bf16.msra.mxu0 %v1812_v2  ;;  %v1828_v8 = vld [vmem:[#allocation7 + $0xa0] ss:$16 sps:$4 sm:$0xff]   ;;  %v1832_v9 = vld [vmem:[#allocation7 + $0x84] ss:$16 sps:$4 sm:$0xff]   ;;  %322 = vmatpush1.bf16.msra.mxu1 %v1825_v7  ;;  %v1835_v10 = vld [vmem:[#allocation7 + $0xcc] ss:$16 sps:$4 sm:$0xff]  }
  0x2a   :  { %282 = vmatprep.subr.bf16.mxu0 %v1815_v3  ;;  %v1837_v11 = vld [vmem:[#allocation7 + $0xc8] ss:$16 sps:$4 sm:$0xff]   ;;  %323 = vmatprep.subr.bf16.mxu1 %v1835_v10  ;;  %v1841_v12 = vld [vmem:[#allocation7 + $0x80] ss:$16 sps:$4 sm:$0xff]   ;;  %v1843_v13 = vld [vmem:[#allocation7 + $0x64] ss:$16 sps:$4 sm:$0xff]  }
  0x2b   :  { %v1845_v14 = vld [vmem:[#allocation7 + $0xac] ss:$16 sps:$4 sm:$0xff]   ;;  %v1849_v15 = vld [vmem:[#allocation7 + $0xa8] ss:$16 sps:$4 sm:$0xff]   ;;  %v1855_v17 = vld [vmem:[#allocation7 + $0x60] ss:$16 sps:$4 sm:$0xff]  }
  0x2c   :  { %v1852_v16 = vld [vmem:[#allocation7 + $0x8c] ss:$16 sps:$4 sm:$0xff]   ;;  %v1858_v18 = vld [vmem:[#allocation7 + $0x44] ss:$16 sps:$4 sm:$0xff]   ;;  %v1861_v19 = vld [vmem:[#allocation7 + $0x88] ss:$16 sps:$4 sm:$0xff]  }
  0x2d   :  { %283 = vmatpush1.bf16.msra.mxu0 %v1818_v4  ;;  %324 = vmatpush1.bf16.msra.mxu1 %v1837_v11  ;;  %v1864_v20 = vld [vmem:[#allocation7 + $0x6c] ss:$16 sps:$4 sm:$0xff]   ;;  %v1867_v21 = vld [vmem:[#allocation7 + $0x40] ss:$16 sps:$4 sm:$0xff]   ;;  %v1869_v22 = vld [vmem:[#allocation7 + $0x24] ss:$16 sps:$4 sm:$0xff]  }
  0x2e   :  { %284 = vmatprep.subr.bf16.mxu0 %v1821_v5  ;;  %325 = vmatprep.subr.bf16.mxu1 %v1845_v14  ;;  %v1873_v23 = vld [vmem:[#allocation7 + $0x68] ss:$16 sps:$4 sm:$0xff]   ;;  %v1876_v24 = vld [vmem:[#allocation7 + $0x4c] ss:$16 sps:$4 sm:$0xff]   ;;  %v1879_v25 = vld [vmem:[#allocation7 + $0x20] ss:$16 sps:$4 sm:$0xff]  }
  0x2f   :  { %v1882_v26 = vld [vmem:[#allocation7 + $0x4] ss:$16 sps:$4 sm:$0xff]   ;;  %v1885_v27 = vld [vmem:[#allocation7 + $0x48] ss:$16 sps:$4 sm:$0xff]   ;;  %v1888_v28 = vld [vmem:[#allocation7 + $0x2c] ss:$16 sps:$4 sm:$0xff]  }
  0x30   :  { %v1891_v29 = vld [vmem:[#allocation7] ss:$16 sps:$4 sm:$0xff]   ;;  %v1895_v30 = vld [vmem:[#allocation7 + $0x28] ss:$16 sps:$4 sm:$0xff]   ;;  %v1898_v31 = vld [vmem:[#allocation7 + $0xc] ss:$16 sps:$4 sm:$0xff]  }
  0x31   :  { %285 = vmatpush1.bf16.msra.mxu0 %v1828_v8  ;;  %326 = vmatpush1.bf16.msra.mxu1 %v1849_v15  ;;  %v1902_v32 = vld [vmem:[#allocation7 + $0x8] ss:$16 sps:$4 sm:$0xff]   ;;  %v93_v34 = vshrl.u32 %v92_v33, 7  ;;  %v90_v36 = vld [vmem:[%s2325_s3] sm:$0xf]  ;;  %v114_v59 = vld [vmem:[#allocation5 + $0x10] sm:$0xff] }
  0x32   :  { %286 = vmatprep.subr.bf16.mxu0 %v1832_v9  ;;  %327 = vmatprep.subr.bf16.mxu1 %v1852_v16  ;;  %v112_v39 = vld [vmem:[#allocation5] sm:$0xff]  ;;  %v115_v55 = vld [vmem:[#allocation5 + $0x18] sm:$0xff]  ;;  %s1771_s3 = smov [#allocation8]  }
  0x33   :  { %v94_v35 = vsub.s32 0, %v93_v34  ;;  %v98_v37 = vsub.s32 1, %v93_v34  ;;  %v106_v45 = vsub.s32 3, %v93_v34  ;;  %v102_v50 = vsub.s32 2, %v93_v34  ;;  %s1370_s7 = sshll.u32 %s1771_s3, 4  ;;  %s1371_s7 = int_to_ptr.vmem [resolvable:$true] %s1370_s7 }
  0x34   :  { %s1737_s8 = scalar_lea.vmem %s1371_s7, 512  ;;  %p1742_p2 = scmp.lt.s32.totalorder %s1371_s7, %s1371_s7 }
  0x35   :  { %287 = vmatpush1.bf16.msra.mxu0 %v1841_v12  ;;  %328 = vmatpush1.bf16.msra.mxu1 %v1861_v19  ;;  %v1947_v38 = vrot.slane %v90_v36, %v94_v35  ;;  %v1949_v40 = vrot.slane %v90_v36, %v98_v37  ;;  %v1953_v52 = vrot.slane %v90_v36, %v106_v45  ;;  %p1738_p1 = scmp.ne.s32.totalorder %s1371_s7, %s1737_s8  ;;  %p1743_p3 = scmp.lt.s32.totalorder %s1737_s8, %s1737_s8 }
  0x36   :  { %288 = vmatprep.subr.bf16.mxu0 %v1843_v13  ;;  %329 = vmatprep.subr.bf16.mxu1 %v1864_v20  ;;  %v1955_v57 = vrot.slane %v90_v36, %v102_v50 }
  0x37   :  { %v116_v42 = vadd.f32 %v112_v39, %v1947_v38  ;;  %v117_v43 = vadd.f32 %v113_v41, %v1949_v40  ;;  %v119_v60 = vadd.f32 %v115_v55, %v1953_v52  ;;  %v390_v55 = vld [vmem:[#allocation2] sm:$0xff]  ;;  %p1744_p4 = por %p1743_p3, %p1742_p2 }
  0x38   :  { %v118_v62 = vadd.f32 %v114_v59, %v1955_v57 }
  0x39   :  { %289 = vmatpush1.bf16.msra.mxu0 %v1855_v17  ;;  %330 = vmatpush1.bf16.msra.mxu1 %v1873_v23  ;;  %p1745_p5 = pnand %p1744_p4, %p1738_p1 }
  0x3a   :  { %290 = vmatprep.subr.bf16.mxu0 %v1858_v18  ;;  %331 = vmatprep.subr.bf16.mxu1 %v1876_v24 }
  0x3d   :  { %291 = vmatpush1.bf16.msra.mxu0 %v1867_v21  ;;  %332 = vmatpush1.bf16.msra.mxu1 %v1885_v27 }
  0x3e   :  { %292 = vmatprep.subr.bf16.mxu0 %v1869_v22  ;;  %333 = vmatprep.subr.bf16.mxu1 %v1888_v28 }
  0x41   :  { %293 = vmatpush1.bf16.msra.mxu0 %v1879_v25  ;;  %334 = vmatpush1.bf16.msra.mxu1 %v1895_v30 }
  0x42   :  { %294 = vmatprep.subr.bf16.mxu0 %v1882_v26  ;;  %335 = vmatprep.subr.bf16.mxu1 %v1898_v31 }
  0x45   :  { %295 = vmatpush1.bf16.msra.mxu0 %v1891_v29  ;;  %336 = vmatpush1.bf16.msra.mxu1 %v1902_v32 }
  0x46   :  { %399 = vmatprep.subr.bf16.mxu0 %v1810_v1  ;;  %440 = vmatprep.subr.bf16.mxu1 %v1823_v6 }
  0x48   :  { %313 = vmatmul.mubr.bf16.vlgmr.msra.gmra.mxu0 %v1770_v0  ;;  %354 = vmatmul.mubr.bf16.vlgmr.msra.gmra.mxu1 %v1770_v0 }
  0x49   :  { %400 = vmatpush1.bf16.msra.mxu0 %v1812_v2  ;;  %431 = vmatprep.mubr.bf16.mxu0 %v1770_v0 }
  0x4a   :  { %401 = vmatprep.subr.bf16.mxu0 %v1815_v3  ;;  %441 = vmatpush1.bf16.msra.mxu1 %v1825_v7 }
  0x4b   :  { %442 = vmatprep.subr.bf16.mxu1 %v1835_v10  ;;  %472 = vmatprep.mubr.bf16.mxu1 %v1770_v0 }
  0x4d   :  { %402 = vmatpush1.bf16.msra.mxu0 %v1818_v4 }
  0x4e   :  { %403 = vmatprep.subr.bf16.mxu0 %v1821_v5  ;;  %443 = vmatpush1.bf16.msra.mxu1 %v1837_v11 }
  0x4f   :  { %444 = vmatprep.subr.bf16.mxu1 %v1845_v14 }
  0x51   :  { %404 = vmatpush1.bf16.msra.mxu0 %v1828_v8 }
  0x52   :  { %405 = vmatprep.subr.bf16.mxu0 %v1832_v9  ;;  %445 = vmatpush1.bf16.msra.mxu1 %v1849_v15 }
  0x53   :  { %446 = vmatprep.subr.bf16.mxu1 %v1852_v16 }
  0x55   :  { %406 = vmatpush1.bf16.msra.mxu0 %v1841_v12 }
  0x56   :  { %407 = vmatprep.subr.bf16.mxu0 %v1843_v13  ;;  %447 = vmatpush1.bf16.msra.mxu1 %v1861_v19 }
  0x57   :  { %448 = vmatprep.subr.bf16.mxu1 %v1864_v20 }
  0x59   :  { %408 = vmatpush1.bf16.msra.mxu0 %v1855_v17 }
  0x5a   :  { %409 = vmatprep.subr.bf16.mxu0 %v1858_v18  ;;  %449 = vmatpush1.bf16.msra.mxu1 %v1873_v23 }
  0x5b   :  { %450 = vmatprep.subr.bf16.mxu1 %v1876_v24 }
  0x5d   :  { %410 = vmatpush1.bf16.msra.mxu0 %v1867_v21 }
  0x5e   :  { %411 = vmatprep.subr.bf16.mxu0 %v1869_v22  ;;  %451 = vmatpush1.bf16.msra.mxu1 %v1885_v27 }
  0x5f   :  { %452 = vmatprep.subr.bf16.mxu1 %v1888_v28 }
  0x61   :  { %412 = vmatpush1.bf16.msra.mxu0 %v1879_v25 }
  0x62   :  { %413 = vmatprep.subr.bf16.mxu0 %v1882_v26  ;;  %453 = vmatpush1.bf16.msra.mxu1 %v1895_v30 }
  0x63   :  { %454 = vmatprep.subr.bf16.mxu1 %v1898_v31 }
  0x65   :  { %414 = vmatpush1.bf16.msra.mxu0 %v1891_v29 }
  0x66   :  { %520 = vmatprep.subr.bf16.mxu0 %v1810_v1  ;;  %455 = vmatpush1.bf16.msra.mxu1 %v1902_v32 }
  0x67   :  { %561 = vmatprep.subr.bf16.mxu1 %v1823_v6 }
 0x108   :  { %v314_v44 = vpop.f32.mrf.mxu0  ;;  %v355_v54 = vpop.f32.mrf.mxu1 }
 0x109   :  { %v362_v46 = vadd.f32 %v314_v44, %v116_v42  ;;  %v364_v34 = vadd.f32 %v355_v54, %v118_v62 }
 0x10a   :  { %v316_v47 = vpop.f32.mrf.mxu0  ;;  %v357_v58 = vpop.f32.mrf.mxu1 }
 0x10b   :  { %v1415_v48 = vmul.f32 -1.442695, %v362_v46  ;;  %v363_v49 = vadd.f32 %v316_v47, %v117_v43  ;;  %v365_v33 = vadd.f32 %v357_v58, %v119_v60  ;;  %v394_v58 = vadd.f32 %v390_v55, %v1947_v38 }
 0x10c   :  { %v318_v51 = vpop.f32.mrf.mxu0  ;;  %v359_v61 = vpop.f32.mrf.mxu1 }
 0x10d   :  { %1501 = vpow2.f32 %v1415_v48  ;;  %v1416_v53 = vmul.f32 -1.442695, %v363_v49  ;;  %v1417_v35 = vmul.f32 -1.442695, %v365_v33 }
 0x10e   :  { %v319_v56 = vpop.f32.mrf.mxu0  ;;  %v360_v63 = vpop.f32.mrf.mxu1 }
 0x10f   :  { %1503 = vpow2.f32 %v1416_v53  ;;  %v391_v56 = vld [vmem:[#allocation2 + $0x8] sm:$0xff] }
 0x110   :  { %1505 = vtanh.f32 %v364_v34  ;;  %v395_v59 = vadd.f32 %v391_v56, %v1949_v40 }
 0x111   :  { %1507 = vpow2.f32 %v1417_v35 }
 0x11a   :  { %v1502_v37 = vpop.eup %1501 }
 0x11b   :  { %v369_v39 = vadd.f32 1.0, %v1502_v37 }
 0x11c   :  { %v1504_v41 = vpop.eup %1503 }
 0x11d   :  { %1509 = vrcp.f32 %v369_v39  ;;  %v375_v42 = vadd.f32 1.0, %v1504_v41  ;;  %v1506_v36 = vpop.eup %1505 }
 0x11e   :  { %v1508_v43 = vpop.eup %1507 }
 0x11f   :  { %1511 = vrcp.f32 %v375_v42  ;;  %v382_v46 = vadd.f32 1.0, %v1508_v43  ;;  %v393_v42 = vld [vmem:[#allocation2 + $0x18] sm:$0xff] }
 0x121   :  { %1513 = vrcp.f32 %v382_v46 }
 0x12a   :  { %v1510_v44 = vpop.eup %1509 }
 0x12b   :  { %v386_v48 = vmul.f32 %v1510_v44, %v1506_v36  ;;  %v397_v44 = vadd.f32 %v393_v42, %v1953_v52 }
 0x12c   :  { %v1512_v45 = vpop.eup %1511 }
 0x12d   :  { %v385_v47 = vmul.f32 0.0, %v1512_v45  ;;  %v392_v45 = vld [vmem:[#allocation2 + $0x10] sm:$0xff] }
 0x12e   :  { %v1514_v50 = vpop.eup %1513 }
 0x12f   :  { %v1959_v49 = vadd.f32 %v386_v48, %v385_v47  ;;  %v396_v47 = vadd.f32 %v392_v45, %v1955_v57 }
 0x131   :  { %1515 = vtanh.f32 %v1959_v49 }
 0x13e   :  { %v1516_v51 = vpop.eup %1515 }
 0x13f   :  { %v389_v53 = vmul.f32 %v1516_v51, %v1514_v50 }
 0x141   :  { %v398_v54 = vpack.c.bf16 %v389_v53, %v389_v53 }
 0x143   :  { %432 = vmatmul.mubr.bf16.vlgmr.msra.gmra.mxu0 %v398_v54  ;;  %473 = vmatmul.mubr.bf16.vlgmr.msra.gmra.mxu1 %v398_v54 }
 0x144   :  { %521 = vmatpush1.bf16.msra.mxu0 %v1812_v2  ;;  %562 = vmatpush1.bf16.msra.mxu1 %v1825_v7 }
 0x145   :  { %522 = vmatprep.subr.bf16.mxu0 %v1815_v3  ;;  %563 = vmatprep.subr.bf16.mxu1 %v1835_v10 }
 0x146   :  { %552 = vmatprep.mubr.bf16.mxu0 %v1770_v0  ;;  %593 = vmatprep.mubr.bf16.mxu1 %v1770_v0 }
 0x148   :  { %523 = vmatpush1.bf16.msra.mxu0 %v1818_v4  ;;  %564 = vmatpush1.bf16.msra.mxu1 %v1837_v11 }
 0x149   :  { %524 = vmatprep.subr.bf16.mxu0 %v1821_v5  ;;  %565 = vmatprep.subr.bf16.mxu1 %v1845_v14 }
 0x14c   :  { %525 = vmatpush1.bf16.msra.mxu0 %v1828_v8  ;;  %566 = vmatpush1.bf16.msra.mxu1 %v1849_v15 }
 0x14d   :  { %526 = vmatprep.subr.bf16.mxu0 %v1832_v9  ;;  %567 = vmatprep.subr.bf16.mxu1 %v1852_v16 }
 0x150   :  { %527 = vmatpush1.bf16.msra.mxu0 %v1841_v12  ;;  %568 = vmatpush1.bf16.msra.mxu1 %v1861_v19 }
 0x151   :  { %528 = vmatprep.subr.bf16.mxu0 %v1843_v13  ;;  %569 = vmatprep.subr.bf16.mxu1 %v1864_v20 }
 0x154   :  { %529 = vmatpush1.bf16.msra.mxu0 %v1855_v17  ;;  %570 = vmatpush1.bf16.msra.mxu1 %v1873_v23 }
 0x155   :  { %530 = vmatprep.subr.bf16.mxu0 %v1858_v18  ;;  %571 = vmatprep.subr.bf16.mxu1 %v1876_v24 }
 0x158   :  { %531 = vmatpush1.bf16.msra.mxu0 %v1867_v21  ;;  %572 = vmatpush1.bf16.msra.mxu1 %v1885_v27 }
 0x159   :  { %532 = vmatprep.subr.bf16.mxu0 %v1869_v22  ;;  %573 = vmatprep.subr.bf16.mxu1 %v1888_v28 }
 0x15c   :  { %533 = vmatpush1.bf16.msra.mxu0 %v1879_v25  ;;  %574 = vmatpush1.bf16.msra.mxu1 %v1895_v30 }
 0x15d   :  { %534 = vmatprep.subr.bf16.mxu0 %v1882_v26  ;;  %575 = vmatprep.subr.bf16.mxu1 %v1898_v31 }
 0x160   :  { %535 = vmatpush1.bf16.msra.mxu0 %v1891_v29  ;;  %576 = vmatpush1.bf16.msra.mxu1 %v1902_v32 }
 0x161   :  { %642 = vmatprep.subr.bf16.mxu0 %v1810_v1  ;;  %683 = vmatprep.subr.bf16.mxu1 %v1823_v6 }
 0x203   :  { %v433_v60 = vpop.f32.mrf.mxu0  ;;  %v474_v61 = vpop.f32.mrf.mxu1 }
 0x204   :  { %v481_v62 = vadd.f32 %v433_v60, %v394_v58  ;;  %v483_v51 = vadd.f32 %v474_v61, %v396_v47 }
 0x205   :  { %v435_v63 = vpop.f32.mrf.mxu0  ;;  %v476_v33 = vpop.f32.mrf.mxu1 }
 0x206   :  { %v1418_v34 = vmul.f32 -1.442695, %v481_v62  ;;  %v482_v35 = vadd.f32 %v435_v63, %v395_v59  ;;  %v484_v46 = vadd.f32 %v476_v33, %v397_v44 }
 0x207   :  { %v437_v37 = vpop.f32.mrf.mxu0  ;;  %v478_v39 = vpop.f32.mrf.mxu1 }
 0x208   :  { %1517 = vpow2.f32 %v1418_v34  ;;  %v1419_v41 = vmul.f32 -1.442695, %v482_v35  ;;  %v1420_v48 = vmul.f32 -1.442695, %v484_v46 }
 0x209   :  { %v438_v36 = vpop.f32.mrf.mxu0  ;;  %v479_v43 = vpop.f32.mrf.mxu1 }
 0x20a   :  { %1519 = vpow2.f32 %v1419_v41  ;;  %v513_v41 = vld [vmem:[#allocation2 + $0x28] sm:$0xff] }
 0x20b   :  { %1521 = vpow2.f32 %v1420_v48  ;;  %v517_v36 = vadd.f32 %v513_v41, %v1949_v40 }
 0x215   :  { %v1518_v50 = vpop.eup %1517 }
 0x216   :  { %v488_v53 = vadd.f32 1.0, %v1518_v50 }
 0x217   :  { %v1520_v54 = vpop.eup %1519 }
 0x218   :  { %1523 = vrcp.f32 %v488_v53  ;;  %v494_v55 = vadd.f32 1.0, %v1520_v54  ;;  %v1522_v56 = vpop.eup %1521 }
 0x219   :  { %1525 = vtanh.f32 %v483_v51  ;;  %v501_v62 = vadd.f32 1.0, %v1522_v56 }
 0x21a   :  { %1527 = vrcp.f32 %v494_v55  ;;  %v515_v55 = vld [vmem:[#allocation2 + $0x38] sm:$0xff] }
 0x21b   :  { %1529 = vrcp.f32 %v501_v62 }
 0x225   :  { %v1524_v58 = vpop.eup %1523 }
 0x226   :  { %v1526_v59 = vpop.eup %1525 }
 0x227   :  { %v1528_v60 = vpop.eup %1527  ;;  %v505_v63 = vmul.f32 %v1526_v59, %v1524_v58  ;;  %v519_v59 = vadd.f32 %v515_v55, %v1953_v52 }
 0x228   :  { %v504_v33 = vmul.f32 %v1528_v60, %v1959_v49  ;;  %v1530_v61 = vpop.eup %1529  ;;  %v512_v49 = vld [vmem:[#allocation2 + $0x20] sm:$0xff]  ;;  %v514_v60 = vld [vmem:[#allocation2 + $0x30] sm:$0xff] }
 0x229   :  { %v516_v42 = vadd.f32 %v512_v49, %v1947_v38 }
 0x22a   :  { %v2001_v34 = vadd.f32 %v505_v63, %v504_v33  ;;  %v518_v63 = vadd.f32 %v514_v60, %v1955_v57 }
 0x22c   :  { %1531 = vtanh.f32 %v2001_v34 }
 0x239   :  { %v1532_v35 = vpop.eup %1531 }
 0x23a   :  { %v508_v37 = vmul.f32 %v1532_v35, %v1530_v61 }
 0x23c   :  { %v509_v39 = vpack.c.bf16 %v508_v37, %v508_v37 }
 0x23e   :  { %510 = vst [vmem:[#allocation8] sm:$0xf] %v509_v39  ;;  %553 = vmatmul.mubr.bf16.vlgmr.msra.gmra.mxu0 %v509_v39  ;;  %594 = vmatmul.mubr.bf16.vlgmr.msra.gmra.mxu1 %v509_v39 }
 0x23f   :  { %643 = vmatpush1.bf16.msra.mxu0 %v1812_v2  ;;  %684 = vmatpush1.bf16.msra.mxu1 %v1825_v7 }
 0x240   :  { %644 = vmatprep.subr.bf16.mxu0 %v1815_v3  ;;  %685 = vmatprep.subr.bf16.mxu1 %v1835_v10 }
 0x241   :  { %674 = vmatprep.mubr.bf16.mxu0 %v1770_v0  ;;  %715 = vmatprep.mubr.bf16.mxu1 %v1770_v0 }
 0x243   :  { %645 = vmatpush1.bf16.msra.mxu0 %v1818_v4  ;;  %686 = vmatpush1.bf16.msra.mxu1 %v1837_v11 }
 0x244   :  { %646 = vmatprep.subr.bf16.mxu0 %v1821_v5  ;;  %687 = vmatprep.subr.bf16.mxu1 %v1845_v14 }
 0x247   :  { %647 = vmatpush1.bf16.msra.mxu0 %v1828_v8  ;;  %688 = vmatpush1.bf16.msra.mxu1 %v1849_v15 }
 0x248   :  { %648 = vmatprep.subr.bf16.mxu0 %v1832_v9  ;;  %689 = vmatprep.subr.bf16.mxu1 %v1852_v16 }
 0x24b   :  { %649 = vmatpush1.bf16.msra.mxu0 %v1841_v12  ;;  %690 = vmatpush1.bf16.msra.mxu1 %v1861_v19 }
 0x24c   :  { %650 = vmatprep.subr.bf16.mxu0 %v1843_v13  ;;  %691 = vmatprep.subr.bf16.mxu1 %v1864_v20 }
 0x24f   :  { %651 = vmatpush1.bf16.msra.mxu0 %v1855_v17  ;;  %692 = vmatpush1.bf16.msra.mxu1 %v1873_v23 }
 0x250   :  { %652 = vmatprep.subr.bf16.mxu0 %v1858_v18  ;;  %693 = vmatprep.subr.bf16.mxu1 %v1876_v24 }
 0x253   :  { %653 = vmatpush1.bf16.msra.mxu0 %v1867_v21  ;;  %694 = vmatpush1.bf16.msra.mxu1 %v1885_v27 }
 0x254   :  { %654 = vmatprep.subr.bf16.mxu0 %v1869_v22  ;;  %695 = vmatprep.subr.bf16.mxu1 %v1888_v28 }
 0x257   :  { %655 = vmatpush1.bf16.msra.mxu0 %v1879_v25  ;;  %696 = vmatpush1.bf16.msra.mxu1 %v1895_v30 }
 0x258   :  { %656 = vmatprep.subr.bf16.mxu0 %v1882_v26  ;;  %697 = vmatprep.subr.bf16.mxu1 %v1898_v31 }
 0x25b   :  { %657 = vmatpush1.bf16.msra.mxu0 %v1891_v29  ;;  %698 = vmatpush1.bf16.msra.mxu1 %v1902_v32 }
 0x25c   :  { %764 = vmatprep.subr.bf16.mxu0 %v1810_v1  ;;  %805 = vmatprep.subr.bf16.mxu1 %v1823_v6 }
 0x2fe   :  { %v554_v43 = vpop.f32.mrf.mxu0  ;;  %v595_v44 = vpop.f32.mrf.mxu1 }
 0x2ff   :  { %v602_v45 = vadd.f32 %v554_v43, %v516_v42  ;;  %v604_v35 = vadd.f32 %v595_v44, %v518_v63 }
 0x300   :  { %v556_v46 = vpop.f32.mrf.mxu0  ;;  %v597_v47 = vpop.f32.mrf.mxu1 }
 0x301   :  { %v1421_v48 = vmul.f32 -1.442695, %v602_v45  ;;  %v603_v50 = vadd.f32 %v556_v46, %v517_v36  ;;  %v605_v62 = vadd.f32 %v597_v47, %v519_v59 }
 0x302   :  { %v558_v51 = vpop.f32.mrf.mxu0  ;;  %v599_v53 = vpop.f32.mrf.mxu1 }
 0x303   :  { %1533 = vpow2.f32 %v1421_v48  ;;  %v1422_v54 = vmul.f32 -1.442695, %v603_v50  ;;  %v1423_v33 = vmul.f32 -1.442695, %v605_v62 }
 0x304   :  { %v559_v56 = vpop.f32.mrf.mxu0  ;;  %v600_v58 = vpop.f32.mrf.mxu1 }
 0x305   :  { %1535 = vpow2.f32 %v1422_v54  ;;  %v635_v54 = vld [vmem:[#allocation2 + $0x48] sm:$0xff] }
 0x306   :  { %1537 = vpow2.f32 %v1423_v33  ;;  %v639_v56 = vadd.f32 %v635_v54, %v1949_v40 }
 0x310   :  { %v1534_v61 = vpop.eup %1533 }
 0x311   :  { %v609_v37 = vadd.f32 1.0, %v1534_v61 }
 0x312   :  { %v1536_v39 = vpop.eup %1535 }
 0x313   :  { %1539 = vrcp.f32 %v609_v37  ;;  %v615_v49 = vadd.f32 1.0, %v1536_v39  ;;  %v1538_v41 = vpop.eup %1537 }
 0x314   :  { %1541 = vtanh.f32 %v604_v35  ;;  %v622_v45 = vadd.f32 1.0, %v1538_v41 }
 0x315   :  { %1543 = vrcp.f32 %v615_v49  ;;  %v637_v49 = vld [vmem:[#allocation2 + $0x58] sm:$0xff] }
 0x316   :  { %1545 = vrcp.f32 %v622_v45 }
 0x320   :  { %v1540_v42 = vpop.eup %1539 }
 0x321   :  { %v1542_v36 = vpop.eup %1541 }
 0x322   :  { %v1544_v43 = vpop.eup %1543  ;;  %v626_v46 = vmul.f32 %v1542_v36, %v1540_v42  ;;  %v641_v36 = vadd.f32 %v637_v49, %v1953_v52 }
 0x323   :  { %v625_v47 = vmul.f32 %v1544_v43, %v2001_v34  ;;  %v1546_v44 = vpop.eup %1545  ;;  %v634_v34 = vld [vmem:[#allocation2 + $0x40] sm:$0xff]  ;;  %v636_v43 = vld [vmem:[#allocation2 + $0x50] sm:$0xff] }
 0x324   :  { %v638_v55 = vadd.f32 %v634_v34, %v1947_v38 }
 0x325   :  { %v2043_v48 = vadd.f32 %v626_v46, %v625_v47  ;;  %v640_v46 = vadd.f32 %v636_v43, %v1955_v57 }
 0x327   :  { %1547 = vtanh.f32 %v2043_v48 }
 0x334   :  { %v1548_v50 = vpop.eup %1547 }
 0x335   :  { %v629_v51 = vmul.f32 %v1548_v50, %v1546_v44 }
 0x337   :  { %v630_v53 = vpack.c.bf16 %v629_v51, %v629_v51 }
 0x339   :  { %632 = vst [vmem:[#allocation8 + $0x4] sm:$0xf] %v630_v53  ;;  %675 = vmatmul.mubr.bf16.vlgmr.msra.gmra.mxu0 %v630_v53  ;;  %716 = vmatmul.mubr.bf16.vlgmr.msra.gmra.mxu1 %v630_v53 }
 0x33a   :  { %765 = vmatpush1.bf16.msra.mxu0 %v1812_v2  ;;  %806 = vmatpush1.bf16.msra.mxu1 %v1825_v7 }
 0x33b   :  { %766 = vmatprep.subr.bf16.mxu0 %v1815_v3  ;;  %807 = vmatprep.subr.bf16.mxu1 %v1835_v10 }
 0x33c   :  { %796 = vmatprep.mubr.bf16.mxu0 %v1770_v0  ;;  %837 = vmatprep.mubr.bf16.mxu1 %v1770_v0 }
 0x33e   :  { %767 = vmatpush1.bf16.msra.mxu0 %v1818_v4  ;;  %808 = vmatpush1.bf16.msra.mxu1 %v1837_v11 }
 0x33f   :  { %768 = vmatprep.subr.bf16.mxu0 %v1821_v5  ;;  %809 = vmatprep.subr.bf16.mxu1 %v1845_v14 }
 0x342   :  { %769 = vmatpush1.bf16.msra.mxu0 %v1828_v8  ;;  %810 = vmatpush1.bf16.msra.mxu1 %v1849_v15 }
 0x343   :  { %770 = vmatprep.subr.bf16.mxu0 %v1832_v9  ;;  %811 = vmatprep.subr.bf16.mxu1 %v1852_v16 }
 0x346   :  { %771 = vmatpush1.bf16.msra.mxu0 %v1841_v12  ;;  %812 = vmatpush1.bf16.msra.mxu1 %v1861_v19 }
 0x347   :  { %772 = vmatprep.subr.bf16.mxu0 %v1843_v13  ;;  %813 = vmatprep.subr.bf16.mxu1 %v1864_v20 }
 0x34a   :  { %773 = vmatpush1.bf16.msra.mxu0 %v1855_v17  ;;  %814 = vmatpush1.bf16.msra.mxu1 %v1873_v23 }
 0x34b   :  { %774 = vmatprep.subr.bf16.mxu0 %v1858_v18  ;;  %815 = vmatprep.subr.bf16.mxu1 %v1876_v24 }
 0x34e   :  { %775 = vmatpush1.bf16.msra.mxu0 %v1867_v21  ;;  %816 = vmatpush1.bf16.msra.mxu1 %v1885_v27 }
 0x34f   :  { %776 = vmatprep.subr.bf16.mxu0 %v1869_v22  ;;  %817 = vmatprep.subr.bf16.mxu1 %v1888_v28 }
 0x352   :  { %777 = vmatpush1.bf16.msra.mxu0 %v1879_v25  ;;  %818 = vmatpush1.bf16.msra.mxu1 %v1895_v30 }
 0x353   :  { %778 = vmatprep.subr.bf16.mxu0 %v1882_v26  ;;  %819 = vmatprep.subr.bf16.mxu1 %v1898_v31 }
 0x356   :  { %779 = vmatpush1.bf16.msra.mxu0 %v1891_v29  ;;  %820 = vmatpush1.bf16.msra.mxu1 %v1902_v32 }
 0x357   :  { %886 = vmatprep.subr.bf16.mxu0 %v1810_v1  ;;  %927 = vmatprep.subr.bf16.mxu1 %v1823_v6 }
 0x3f9   :  { %v676_v58 = vpop.f32.mrf.mxu0  ;;  %v717_v59 = vpop.f32.mrf.mxu1 }
 0x3fa   :  { %v724_v60 = vadd.f32 %v676_v58, %v638_v55  ;;  %v726_v50 = vadd.f32 %v717_v59, %v640_v46 }
 0x3fb   :  { %v678_v62 = vpop.f32.mrf.mxu0  ;;  %v719_v63 = vpop.f32.mrf.mxu1 }
 0x3fc   :  { %v1424_v33 = vmul.f32 -1.442695, %v724_v60  ;;  %v725_v61 = vadd.f32 %v678_v62, %v639_v56  ;;  %v727_v45 = vadd.f32 %v719_v63, %v641_v36 }
 0x3fd   :  { %v680_v35 = vpop.f32.mrf.mxu0  ;;  %v721_v37 = vpop.f32.mrf.mxu1 }
 0x3fe   :  { %1549 = vpow2.f32 %v1424_v33  ;;  %v1425_v39 = vmul.f32 -1.442695, %v725_v61  ;;  %v1426_v47 = vmul.f32 -1.442695, %v727_v45 }
 0x3ff   :  { %v681_v41 = vpop.f32.mrf.mxu0  ;;  %v722_v42 = vpop.f32.mrf.mxu1 }
 0x400   :  { %1551 = vpow2.f32 %v1425_v39 }
 0x401   :  { %1553 = vpow2.f32 %v1426_v47  ;;  %v758_v47 = vld [vmem:[#allocation2 + $0x70] sm:$0xff] }
 0x40b   :  { %v1550_v44 = vpop.eup %1549 }
 0x40c   :  { %v731_v51 = vadd.f32 1.0, %v1550_v44 }
 0x40d   :  { %v1552_v53 = vpop.eup %1551 }
 0x40e   :  { %1555 = vrcp.f32 %v731_v51  ;;  %v737_v34 = vadd.f32 1.0, %v1552_v53  ;;  %v1554_v54 = vpop.eup %1553 }
 0x40f   :  { %1557 = vtanh.f32 %v726_v50  ;;  %v744_v60 = vadd.f32 1.0, %v1554_v54  ;;  %v762_v50 = vadd.f32 %v758_v47, %v1955_v57 }
 0x410   :  { %1559 = vrcp.f32 %v737_v34 }
 0x411   :  { %1561 = vrcp.f32 %v744_v60 }
 0x41b   :  { %v1556_v55 = vpop.eup %1555 }
 0x41c   :  { %v1558_v56 = vpop.eup %1557 }
 0x41d   :  { %v1560_v58 = vpop.eup %1559  ;;  %v748_v62 = vmul.f32 %v1558_v56, %v1556_v55 }
 0x41e   :  { %v747_v63 = vmul.f32 %v1560_v58, %v2043_v48  ;;  %v1562_v59 = vpop.eup %1561 }
 0x420   :  { %v2085_v33 = vadd.f32 %v748_v62, %v747_v63 }
 0x422   :  { %1563 = vtanh.f32 %v2085_v33 }
 0x42f   :  { %v1564_v61 = vpop.eup %1563 }
 0x430   :  { %v751_v35 = vmul.f32 %v1564_v61, %v1562_v59 }
 0x432   :  { %v752_v37 = vpack.c.bf16 %v751_v35, %v751_v35 }
 0x434   :  { %754 = vst [vmem:[#allocation8 + $0x8] sm:$0xf] %v752_v37  ;;  %797 = vmatmul.mubr.bf16.vlgmr.msra.gmra.mxu0 %v752_v37  ;;  %838 = vmatmul.mubr.bf16.vlgmr.msra.gmra.mxu1 %v752_v37 }
 0x435   :  { %887 = vmatpush1.bf16.msra.mxu0 %v1812_v2  ;;  %928 = vmatpush1.bf16.msra.mxu1 %v1825_v7  ;;  %v756_v2 = vld [vmem:[#allocation2 + $0x60] sm:$0xff] }
 0x436   :  { %888 = vmatprep.subr.bf16.mxu0 %v1815_v3  ;;  %929 = vmatprep.subr.bf16.mxu1 %v1835_v10  ;;  %v757_v3 = vld [vmem:[#allocation2 + $0x68] sm:$0xff] }
 0x437   :  { %918 = vmatprep.mubr.bf16.mxu0 %v1770_v0  ;;  %959 = vmatprep.mubr.bf16.mxu1 %v1770_v0 }
 0x439   :  { %889 = vmatpush1.bf16.msra.mxu0 %v1818_v4  ;;  %930 = vmatpush1.bf16.msra.mxu1 %v1837_v11  ;;  %v760_v4 = vadd.f32 %v756_v2, %v1947_v38 }
 0x43a   :  { %890 = vmatprep.subr.bf16.mxu0 %v1821_v5  ;;  %931 = vmatprep.subr.bf16.mxu1 %v1845_v14  ;;  %v761_v5 = vadd.f32 %v757_v3, %v1949_v40 }
 0x43d   :  { %891 = vmatpush1.bf16.msra.mxu0 %v1828_v8  ;;  %932 = vmatpush1.bf16.msra.mxu1 %v1849_v15 }
 0x43e   :  { %892 = vmatprep.subr.bf16.mxu0 %v1832_v9  ;;  %933 = vmatprep.subr.bf16.mxu1 %v1852_v16 }
 0x441   :  { %893 = vmatpush1.bf16.msra.mxu0 %v1841_v12  ;;  %934 = vmatpush1.bf16.msra.mxu1 %v1861_v19 }
 0x442   :  { %894 = vmatprep.subr.bf16.mxu0 %v1843_v13  ;;  %935 = vmatprep.subr.bf16.mxu1 %v1864_v20 }
 0x445   :  { %895 = vmatpush1.bf16.msra.mxu0 %v1855_v17  ;;  %936 = vmatpush1.bf16.msra.mxu1 %v1873_v23 }
 0x446   :  { %896 = vmatprep.subr.bf16.mxu0 %v1858_v18  ;;  %937 = vmatprep.subr.bf16.mxu1 %v1876_v24 }
 0x449   :  { %897 = vmatpush1.bf16.msra.mxu0 %v1867_v21  ;;  %938 = vmatpush1.bf16.msra.mxu1 %v1885_v27 }
 0x44a   :  { %898 = vmatprep.subr.bf16.mxu0 %v1869_v22  ;;  %939 = vmatprep.subr.bf16.mxu1 %v1888_v28 }
 0x44d   :  { %899 = vmatpush1.bf16.msra.mxu0 %v1879_v25  ;;  %940 = vmatpush1.bf16.msra.mxu1 %v1895_v30 }
 0x44e   :  { %900 = vmatprep.subr.bf16.mxu0 %v1882_v26  ;;  %941 = vmatprep.subr.bf16.mxu1 %v1898_v31 }
 0x451   :  { %901 = vmatpush1.bf16.msra.mxu0 %v1891_v29  ;;  %942 = vmatpush1.bf16.msra.mxu1 %v1902_v32 }
 0x452   :  { %1008 = vmatprep.subr.bf16.mxu0 %v1810_v1  ;;  %1049 = vmatprep.subr.bf16.mxu1 %v1823_v6  ;;  %v759_v1 = vld [vmem:[#allocation2 + $0x78] sm:$0xff] }
 0x453   :  { %v763_v46 = vadd.f32 %v759_v1, %v1953_v52 }
 0x4f4   :  { %v798_v7 = vpop.f32.mrf.mxu0  ;;  %v839_v8 = vpop.f32.mrf.mxu1 }
 0x4f5   :  { %v846_v9 = vadd.f32 %v798_v7, %v760_v4  ;;  %v848_v34 = vadd.f32 %v839_v8, %v762_v50  ;;  %v2130_v7 = vld [vmem:[#allocation7 + $0xe0] ss:$16 sps:$4 sm:$0xff]   ;;  %v2133_v8 = vld [vmem:[#allocation7 + $0xe8] ss:$16 sps:$4 sm:$0xff]  }
 0x4f6   :  { %v800_v48 = vpop.f32.mrf.mxu0  ;;  %v841_v39 = vpop.f32.mrf.mxu1 }
 0x4f7   :  { %v1427_v49 = vmul.f32 -1.442695, %v846_v9  ;;  %v847_v41 = vadd.f32 %v800_v48, %v761_v5  ;;  %v849_v44 = vadd.f32 %v841_v39, %v763_v46  ;;  %v2142_v9 = vld [vmem:[#allocation7 + $0xc0] ss:$16 sps:$4 sm:$0xff]   ;;  %v2146_v48 = vld [vmem:[#allocation7 + $0xa4] ss:$16 sps:$4 sm:$0xff]  }
 0x4f8   :  { %v802_v42 = vpop.f32.mrf.mxu0  ;;  %v843_v36 = vpop.f32.mrf.mxu1  ;;  %v2150_v39 = vld [vmem:[#allocation7 + $0xa0] ss:$16 sps:$4 sm:$0xff]  }
 0x4f9   :  { %1565 = vpow2.f32 %v1427_v49  ;;  %v1428_v43 = vmul.f32 -1.442695, %v847_v41  ;;  %v1429_v51 = vmul.f32 -1.442695, %v849_v44 }
 0x4fa   :  { %v803_v45 = vpop.f32.mrf.mxu0  ;;  %v844_v6 = vpop.f32.mrf.mxu1 }
 0x4fb   :  { %1567 = vpow2.f32 %v1428_v43 }
 0x4fc   :  { %1569 = vpow2.f32 %v1429_v51 }
 0x506   :  { %v1566_v53 = vpop.eup %1565 }
 0x507   :  { %v853_v54 = vadd.f32 1.0, %v1566_v53 }
 0x508   :  { %v1568_v55 = vpop.eup %1567 }
 0x509   :  { %1571 = vrcp.f32 %v853_v54  ;;  %v859_v56 = vadd.f32 1.0, %v1568_v55  ;;  %v1570_v58 = vpop.eup %1569 }
 0x50a   :  { %1573 = vtanh.f32 %v848_v34  ;;  %v866_v59 = vadd.f32 1.0, %v1570_v58 }
 0x50b   :  { %1575 = vrcp.f32 %v859_v56 }
 0x50c   :  { %1577 = vrcp.f32 %v866_v59  ;;  %v2207_v59 = vld [vmem:[#allocation7 + $0xa8] ss:$16 sps:$4 sm:$0xff]  }
 0x516   :  { %v1572_v60 = vpop.eup %1571 }
 0x517   :  { %v1574_v62 = vpop.eup %1573 }
 0x518   :  { %v1576_v63 = vpop.eup %1575  ;;  %v870_v61 = vmul.f32 %v1574_v62, %v1572_v60  ;;  %v2193_v60 = vld [vmem:[#allocation7 + $0xcc] ss:$16 sps:$4 sm:$0xff]   ;;  %v2199_v62 = vld [vmem:[#allocation7 + $0xc8] ss:$16 sps:$4 sm:$0xff]  }
 0x519   :  { %v869_v35 = vmul.f32 %v1576_v63, %v2085_v33  ;;  %v1578_v2 = vpop.eup %1577  ;;  %v2136_v33 = vld [vmem:[#allocation7 + $0xc4] ss:$16 sps:$4 sm:$0xff]   ;;  %v2203_v63 = vld [vmem:[#allocation7 + $0xac] ss:$16 sps:$4 sm:$0xff]  }
 0x51b   :  { %v2127_v37 = vadd.f32 %v870_v61, %v869_v35  ;;  %v2211_v61 = vld [vmem:[#allocation7 + $0x8c] ss:$16 sps:$4 sm:$0xff]   ;;  %v2214_v35 = vld [vmem:[#allocation7 + $0x80] ss:$16 sps:$4 sm:$0xff]  }
 0x51d   :  { %1579 = vtanh.f32 %v2127_v37 }
 0x52a   :  { %v1580_v3 = vpop.eup %1579 }
 0x52b   :  { %v873_v4 = vmul.f32 %v1580_v3, %v1578_v2  ;;  %v2220_v2 = vld [vmem:[#allocation7 + $0x64] ss:$16 sps:$4 sm:$0xff]   ;;  %v2223_v3 = vld [vmem:[#allocation7 + $0x6c] ss:$16 sps:$4 sm:$0xff]  }
 0x52d   :  { %v874_v5 = vpack.c.bf16 %v873_v4, %v873_v4  ;;  %v2226_v4 = vld [vmem:[#allocation7 + $0x60] ss:$16 sps:$4 sm:$0xff]  }
 0x52f   :  { %876 = vst [vmem:[#allocation8 + $0xc] sm:$0xf] %v874_v5  ;;  %919 = vmatmul.mubr.bf16.vlgmr.msra.gmra.mxu0 %v874_v5  ;;  %960 = vmatmul.mubr.bf16.vlgmr.msra.gmra.mxu1 %v874_v5  ;;  %v2229_v5 = vld [vmem:[#allocation7 + $0x68] ss:$16 sps:$4 sm:$0xff]  }
 0x530   :  { %1009 = vmatpush1.bf16.msra.mxu0 %v2130_v7  ;;  %1050 = vmatpush1.bf16.msra.mxu1 %v2133_v8 }
 0x531   :  { %1010 = vmatprep.subr.bf16.mxu0 %v2136_v33  ;;  %1051 = vmatprep.subr.bf16.mxu1 %v1835_v10  ;;  %v2154_v10 = vld [vmem:[#allocation7 + $0x84] ss:$16 sps:$4 sm:$0xff]  }
 0x532   :  { %1040 = vmatprep.mubr.bf16.mxu0 %v1770_v0  ;;  %1081 = vmatprep.mubr.bf16.mxu1 %v1770_v0 }
 0x534   :  { %1011 = vmatpush1.bf16.msra.mxu0 %v2142_v9  ;;  %1052 = vmatpush1.bf16.msra.mxu1 %v1837_v11  ;;  %v2176_v11 = vld [vmem:[#allocation7 + $0xe4] ss:$16 sps:$4 sm:$0xff]  }
 0x535   :  { %1012 = vmatprep.subr.bf16.mxu0 %v2146_v48  ;;  %1053 = vmatprep.subr.bf16.mxu1 %v1845_v14  ;;  %v879_v14 = vld [vmem:[#allocation2 + $0x88] sm:$0xff] }
 0x538   :  { %1013 = vmatpush1.bf16.msra.mxu0 %v2150_v39  ;;  %1054 = vmatpush1.bf16.msra.mxu1 %v1849_v15 }
 0x539   :  { %1014 = vmatprep.subr.bf16.mxu0 %v2154_v10  ;;  %1055 = vmatprep.subr.bf16.mxu1 %v1852_v16  ;;  %v883_v16 = vadd.f32 %v879_v14, %v1949_v40  ;;  %v2235_v14 = vld [vmem:[#allocation7 + $0x4c] ss:$16 sps:$4 sm:$0xff]  }
 0x53c   :  { %1015 = vmatpush1.bf16.msra.mxu0 %v1841_v12  ;;  %1056 = vmatpush1.bf16.msra.mxu1 %v1861_v19  ;;  %v2179_v12 = vld [vmem:[#allocation7 + $0xec] ss:$16 sps:$4 sm:$0xff]  }
 0x53d   :  { %1016 = vmatprep.subr.bf16.mxu0 %v1843_v13  ;;  %1057 = vmatprep.subr.bf16.mxu1 %v1864_v20  ;;  %v878_v13 = vld [vmem:[#allocation2 + $0x80] sm:$0xff] }
 0x53e   :  { %v882_v15 = vadd.f32 %v878_v13, %v1947_v38  ;;  %v2232_v13 = vld [vmem:[#allocation7 + $0x44] ss:$16 sps:$4 sm:$0xff]  }
 0x540   :  { %1017 = vmatpush1.bf16.msra.mxu0 %v1855_v17  ;;  %1058 = vmatpush1.bf16.msra.mxu1 %v1873_v23 }
 0x541   :  { %1018 = vmatprep.subr.bf16.mxu0 %v1858_v18  ;;  %1059 = vmatprep.subr.bf16.mxu1 %v1876_v24 }
 0x544   :  { %1019 = vmatpush1.bf16.msra.mxu0 %v1867_v21  ;;  %1060 = vmatpush1.bf16.msra.mxu1 %v1885_v27  ;;  %v881_v27 = vld [vmem:[#allocation2 + $0x98] sm:$0xff] }
 0x545   :  { %1020 = vmatprep.subr.bf16.mxu0 %v1869_v22  ;;  %1061 = vmatprep.subr.bf16.mxu1 %v1888_v28 }
 0x548   :  { %1021 = vmatpush1.bf16.msra.mxu0 %v1879_v25  ;;  %1062 = vmatpush1.bf16.msra.mxu1 %v1895_v30  ;;  %v885_v30 = vadd.f32 %v881_v27, %v1953_v52 }
 0x549   :  { %1022 = vmatprep.subr.bf16.mxu0 %v1882_v26  ;;  %1063 = vmatprep.subr.bf16.mxu1 %v1898_v31  ;;  %v880_v31 = vld [vmem:[#allocation2 + $0x90] sm:$0xff] }
 0x54a   :  { %v884_v49 = vadd.f32 %v880_v31, %v1955_v57 }
 0x54c   :  { %1023 = vmatpush1.bf16.msra.mxu0 %v1891_v29  ;;  %1064 = vmatpush1.bf16.msra.mxu1 %v1902_v32 }
 0x54d   :  { %1130 = vmatprep.subr.bf16.mxu0 %v2176_v11  ;;  %1171 = vmatprep.subr.bf16.mxu1 %v2179_v12 }
 0x5ef   :  { %v920_v17 = vpop.f32.mrf.mxu0  ;;  %v961_v18 = vpop.f32.mrf.mxu1 }
 0x5f0   :  { %v968_v19 = vadd.f32 %v920_v17, %v882_v15  ;;  %v970_v36 = vadd.f32 %v961_v18, %v884_v49  ;;  %v2238_v15 = vld [vmem:[#allocation7 + $0x40] ss:$16 sps:$4 sm:$0xff]   ;;  %v2244_v17 = vld [vmem:[#allocation7 + $0x24] ss:$16 sps:$4 sm:$0xff]   ;;  %v2247_v18 = vld [vmem:[#allocation7 + $0x2c] ss:$16 sps:$4 sm:$0xff]  }
 0x5f1   :  { %v922_v20 = vpop.f32.mrf.mxu0  ;;  %v963_v21 = vpop.f32.mrf.mxu1 }
 0x5f2   :  { %v1430_v22 = vmul.f32 -1.442695, %v968_v19  ;;  %v969_v23 = vadd.f32 %v922_v20, %v883_v16  ;;  %v971_v32 = vadd.f32 %v963_v21, %v885_v30  ;;  %v2241_v16 = vld [vmem:[#allocation7 + $0x48] ss:$16 sps:$4 sm:$0xff]   ;;  %v2250_v19 = vld [vmem:[#allocation7 + $0x20] ss:$16 sps:$4 sm:$0xff]  }
 0x5f3   :  { %v924_v24 = vpop.f32.mrf.mxu0  ;;  %v965_v25 = vpop.f32.mrf.mxu1  ;;  %v2253_v20 = vld [vmem:[#allocation7 + $0x28] ss:$16 sps:$4 sm:$0xff]   ;;  %v2256_v21 = vld [vmem:[#allocation7 + $0x4] ss:$16 sps:$4 sm:$0xff]  }
 0x5f4   :  { %1581 = vpow2.f32 %v1430_v22  ;;  %v1431_v26 = vmul.f32 -1.442695, %v969_v23  ;;  %v1432_v41 = vmul.f32 -1.442695, %v971_v32  ;;  %v2259_v22 = vld [vmem:[#allocation7 + $0xc] ss:$16 sps:$4 sm:$0xff]  }
 0x5f5   :  { %v925_v28 = vpop.f32.mrf.mxu0  ;;  %v966_v29 = vpop.f32.mrf.mxu1  ;;  %v2262_v23 = vld [vmem:[#allocation7] ss:$16 sps:$4 sm:$0xff]   ;;  %v2265_v24 = vld [vmem:[#allocation7 + $0x8] ss:$16 sps:$4 sm:$0xff]  }
 0x5f6   :  { %1583 = vpow2.f32 %v1431_v26  ;;  %v1000_v25 = vld [vmem:[#allocation2 + $0xa0] sm:$0xff]  ;;  %v1001_v26 = vld [vmem:[#allocation2 + $0xa8] sm:$0xff] }
 0x5f7   :  { %1585 = vpow2.f32 %v1432_v41  ;;  %v1004_v27 = vadd.f32 %v1000_v25, %v1947_v38  ;;  %v1005_v28 = vadd.f32 %v1001_v26, %v1949_v40 }
 0x601   :  { %v1582_v42 = vpop.eup %1581 }
 0x602   :  { %v975_v43 = vadd.f32 1.0, %v1582_v42 }
 0x603   :  { %v1584_v1 = vpop.eup %1583 }
 0x604   :  { %1587 = vrcp.f32 %v975_v43  ;;  %v981_v45 = vadd.f32 1.0, %v1584_v1  ;;  %v1586_v6 = vpop.eup %1585 }
 0x605   :  { %1589 = vtanh.f32 %v970_v36  ;;  %v988_v50 = vadd.f32 1.0, %v1586_v6 }
 0x606   :  { %1591 = vrcp.f32 %v981_v45 }
 0x607   :  { %1593 = vrcp.f32 %v988_v50 }
 0x611   :  { %v1588_v46 = vpop.eup %1587 }
 0x612   :  { %v1590_v47 = vpop.eup %1589 }
 0x613   :  { %v1592_v44 = vpop.eup %1591  ;;  %v992_v51 = vmul.f32 %v1590_v47, %v1588_v46  ;;  %v1002_v46 = vld [vmem:[#allocation2 + $0xb0] sm:$0xff] }
 0x614   :  { %v991_v53 = vmul.f32 %v1592_v44, %v2127_v37  ;;  %v1594_v54 = vpop.eup %1593  ;;  %v2217_v37 = vld [vmem:[#allocation7 + $0x88] ss:$16 sps:$4 sm:$0xff]   ;;  %v1006_v44 = vadd.f32 %v1002_v46, %v1955_v57  ;;  %v1244_v46 = vld [vmem:[#allocation2 + $0xe0] sm:$0xff] }
 0x616   :  { %v2187_v34 = vadd.f32 %v992_v51, %v991_v53 }
 0x618   :  { %1595 = vtanh.f32 %v2187_v34 }
 0x625   :  { %v1596_v55 = vpop.eup %1595 }
 0x626   :  { %v995_v56 = vmul.f32 %v1596_v55, %v1594_v54 }
 0x628   :  { %v996_v58 = vpack.c.bf16 %v995_v56, %v995_v56 }
 0x62a   :  { %998 = vst [vmem:[#allocation8 + $0x10] sm:$0xf] %v996_v58  ;;  %1041 = vmatmul.mubr.bf16.vlgmr.msra.gmra.mxu0 %v996_v58  ;;  %1082 = vmatmul.mubr.bf16.vlgmr.msra.gmra.mxu1 %v996_v58 }
 0x62b   :  { %1131 = vmatpush1.bf16.msra.mxu0 %v2130_v7  ;;  %1172 = vmatpush1.bf16.msra.mxu1 %v2133_v8 }
 0x62c   :  { %1132 = vmatprep.subr.bf16.mxu0 %v2136_v33  ;;  %1173 = vmatprep.subr.bf16.mxu1 %v2193_v60 }
 0x62d   :  { %1162 = vmatprep.mubr.bf16.mxu0 %v1770_v0  ;;  %1203 = vmatprep.mubr.bf16.mxu1 %v1770_v0 }
 0x62f   :  { %1133 = vmatpush1.bf16.msra.mxu0 %v2142_v9  ;;  %1174 = vmatpush1.bf16.msra.mxu1 %v2199_v62 }
 0x630   :  { %1134 = vmatprep.subr.bf16.mxu0 %v2146_v48  ;;  %1175 = vmatprep.subr.bf16.mxu1 %v2203_v63 }
 0x633   :  { %1135 = vmatpush1.bf16.msra.mxu0 %v2150_v39  ;;  %1176 = vmatpush1.bf16.msra.mxu1 %v2207_v59 }
 0x634   :  { %1136 = vmatprep.subr.bf16.mxu0 %v2154_v10  ;;  %1177 = vmatprep.subr.bf16.mxu1 %v2211_v61 }
 0x637   :  { %1137 = vmatpush1.bf16.msra.mxu0 %v2214_v35  ;;  %1178 = vmatpush1.bf16.msra.mxu1 %v2217_v37 }
 0x638   :  { %1138 = vmatprep.subr.bf16.mxu0 %v2220_v2  ;;  %1179 = vmatprep.subr.bf16.mxu1 %v2223_v3 }
 0x63b   :  { %1139 = vmatpush1.bf16.msra.mxu0 %v2226_v4  ;;  %1180 = vmatpush1.bf16.msra.mxu1 %v2229_v5 }
 0x63c   :  { %1140 = vmatprep.subr.bf16.mxu0 %v2232_v13  ;;  %1181 = vmatprep.subr.bf16.mxu1 %v2235_v14 }
 0x63f   :  { %1141 = vmatpush1.bf16.msra.mxu0 %v2238_v15  ;;  %1182 = vmatpush1.bf16.msra.mxu1 %v2241_v16 }
 0x640   :  { %1142 = vmatprep.subr.bf16.mxu0 %v2244_v17  ;;  %1183 = vmatprep.subr.bf16.mxu1 %v2247_v18 }
 0x643   :  { %1143 = vmatpush1.bf16.msra.mxu0 %v2250_v19  ;;  %1184 = vmatpush1.bf16.msra.mxu1 %v2253_v20 }
 0x644   :  { %1144 = vmatprep.subr.bf16.mxu0 %v2256_v21  ;;  %1185 = vmatprep.subr.bf16.mxu1 %v2259_v22 }
 0x647   :  { %1145 = vmatpush1.bf16.msra.mxu0 %v2262_v23  ;;  %1186 = vmatpush1.bf16.msra.mxu1 %v2265_v24 }
 0x648   :  { %1252 = vmatprep.subr.bf16.mxu0 %v2176_v11  ;;  %1293 = vmatprep.subr.bf16.mxu1 %v2179_v12  ;;  %v1003_v11 = vld [vmem:[#allocation2 + $0xb8] sm:$0xff] }
 0x649   :  { %v1007_v6 = vadd.f32 %v1003_v11, %v1953_v52 }
 0x6ea   :  { %v1042_v29 = vpop.f32.mrf.mxu0  ;;  %v1083_v30 = vpop.f32.mrf.mxu1 }
 0x6eb   :  { %v1090_v31 = vadd.f32 %v1042_v29, %v1004_v27  ;;  %v1092_v53 = vadd.f32 %v1083_v30, %v1006_v44  ;;  %v1248_v44 = vadd.f32 %v1244_v46, %v1947_v38 }
 0x6ec   :  { %v1044_v32 = vpop.f32.mrf.mxu0  ;;  %v1085_v49 = vpop.f32.mrf.mxu1 }
 0x6ed   :  { %v1433_v41 = vmul.f32 -1.442695, %v1090_v31  ;;  %v1091_v42 = vadd.f32 %v1044_v32, %v1005_v28  ;;  %v1093_v47 = vadd.f32 %v1085_v49, %v1007_v6 }
 0x6ee   :  { %v1046_v36 = vpop.f32.mrf.mxu0  ;;  %v1087_v43 = vpop.f32.mrf.mxu1 }
 0x6ef   :  { %1597 = vpow2.f32 %v1433_v41  ;;  %v1434_v1 = vmul.f32 -1.442695, %v1091_v42  ;;  %v1435_v50 = vmul.f32 -1.442695, %v1093_v47  ;;  %v1245_v47 = vld [vmem:[#allocation2 + $0xe8] sm:$0xff] }
 0x6f0   :  { %v1047_v45 = vpop.f32.mrf.mxu0  ;;  %v1088_v12 = vpop.f32.mrf.mxu1 }
 0x6f1   :  { %1599 = vpow2.f32 %v1434_v1 }
 0x6f2   :  { %1601 = vpow2.f32 %v1435_v50  ;;  %v1249_v50 = vadd.f32 %v1245_v47, %v1949_v40 }
 0x6fc   :  { %v1598_v51 = vpop.eup %1597 }
 0x6fd   :  { %v1097_v54 = vadd.f32 1.0, %v1598_v51 }
 0x6fe   :  { %v1600_v55 = vpop.eup %1599 }
 0x6ff   :  { %1603 = vrcp.f32 %v1097_v54  ;;  %v1103_v56 = vadd.f32 1.0, %v1600_v55  ;;  %v1602_v58 = vpop.eup %1601 }
 0x700   :  { %1605 = vtanh.f32 %v1092_v53  ;;  %v1110_v28 = vadd.f32 1.0, %v1602_v58 }
 0x701   :  { %1607 = vrcp.f32 %v1103_v56 }
 0x702   :  { %1609 = vrcp.f32 %v1110_v28 }
 0x70c   :  { %v1604_v25 = vpop.eup %1603 }
 0x70d   :  { %v1606_v26 = vpop.eup %1605 }
 0x70e   :  { %v1608_v27 = vpop.eup %1607  ;;  %v1114_v29 = vmul.f32 %v1606_v26, %v1604_v25 }
 0x70f   :  { %v1113_v31 = vmul.f32 %v1608_v27, %v2187_v34  ;;  %v1610_v30 = vpop.eup %1609 }
 0x711   :  { %v2275_v32 = vadd.f32 %v1114_v29, %v1113_v31  ;;  %v1247_v29 = vld [vmem:[#allocation2 + $0xf8] sm:$0xff] }
 0x713   :  { %1611 = vtanh.f32 %v2275_v32 }
 0x720   :  { %v1612_v49 = vpop.eup %1611 }
 0x721   :  { %v1117_v41 = vmul.f32 %v1612_v49, %v1610_v30  ;;  %v1251_v30 = vadd.f32 %v1247_v29, %v1953_v52 }
 0x723   :  { %v1118_v42 = vpack.c.bf16 %v1117_v41, %v1117_v41 }
 0x725   :  { %1120 = vst [vmem:[#allocation8 + $0x14] sm:$0xf] %v1118_v42  ;;  %1163 = vmatmul.mubr.bf16.vlgmr.msra.gmra.mxu0 %v1118_v42  ;;  %1204 = vmatmul.mubr.bf16.vlgmr.msra.gmra.mxu1 %v1118_v42 }
 0x726   :  { %1253 = vmatpush1.bf16.msra.mxu0 %v2130_v7  ;;  %1294 = vmatpush1.bf16.msra.mxu1 %v2133_v8  ;;  %v1123_v7 = vld [vmem:[#allocation2 + $0xc8] sm:$0xff] }
 0x727   :  { %1254 = vmatprep.subr.bf16.mxu0 %v2136_v33  ;;  %1295 = vmatprep.subr.bf16.mxu1 %v2193_v60  ;;  %v1127_v33 = vadd.f32 %v1123_v7, %v1949_v40 }
 0x728   :  { %1284 = vmatprep.mubr.bf16.mxu0 %v1770_v0  ;;  %1325 = vmatprep.mubr.bf16.mxu1 %v1770_v0  ;;  %v1122_v0 = vld [vmem:[#allocation2 + $0xc0] sm:$0xff] }
 0x729   :  { %v1126_v8 = vadd.f32 %v1122_v0, %v1947_v38  ;;  %v1246_v38 = vld [vmem:[#allocation2 + $0xf0] sm:$0xff] }
 0x72a   :  { %1255 = vmatpush1.bf16.msra.mxu0 %v2142_v9  ;;  %1296 = vmatpush1.bf16.msra.mxu1 %v2199_v62  ;;  %v1250_v40 = vadd.f32 %v1246_v38, %v1955_v57 }
 0x72b   :  { %1256 = vmatprep.subr.bf16.mxu0 %v2146_v48  ;;  %1297 = vmatprep.subr.bf16.mxu1 %v2203_v63 }
 0x72e   :  { %1257 = vmatpush1.bf16.msra.mxu0 %v2150_v39  ;;  %1298 = vmatpush1.bf16.msra.mxu1 %v2207_v59 }
 0x72f   :  { %1258 = vmatprep.subr.bf16.mxu0 %v2154_v10  ;;  %1299 = vmatprep.subr.bf16.mxu1 %v2211_v61 }
 0x732   :  { %1259 = vmatpush1.bf16.msra.mxu0 %v2214_v35  ;;  %1300 = vmatpush1.bf16.msra.mxu1 %v2217_v37  ;;  %v1125_v35 = vld [vmem:[#allocation2 + $0xd8] sm:$0xff] }
 0x733   :  { %1260 = vmatprep.subr.bf16.mxu0 %v2220_v2  ;;  %1301 = vmatprep.subr.bf16.mxu1 %v2223_v3  ;;  %v1129_v3 = vadd.f32 %v1125_v35, %v1953_v52 }
 0x736   :  { %1261 = vmatpush1.bf16.msra.mxu0 %v2226_v4  ;;  %1302 = vmatpush1.bf16.msra.mxu1 %v2229_v5  ;;  %v1124_v4 = vld [vmem:[#allocation2 + $0xd0] sm:$0xff] }
 0x737   :  { %1262 = vmatprep.subr.bf16.mxu0 %v2232_v13  ;;  %1303 = vmatprep.subr.bf16.mxu1 %v2235_v14  ;;  %v1128_v13 = vadd.f32 %v1124_v4, %v1955_v57 }
 0x73a   :  { %1263 = vmatpush1.bf16.msra.mxu0 %v2238_v15  ;;  %1304 = vmatpush1.bf16.msra.mxu1 %v2241_v16 }
 0x73b   :  { %1264 = vmatprep.subr.bf16.mxu0 %v2244_v17  ;;  %1305 = vmatprep.subr.bf16.mxu1 %v2247_v18 }
 0x73e   :  { %1265 = vmatpush1.bf16.msra.mxu0 %v2250_v19  ;;  %1306 = vmatpush1.bf16.msra.mxu1 %v2253_v20 }
 0x73f   :  { %1266 = vmatprep.subr.bf16.mxu0 %v2256_v21  ;;  %1307 = vmatprep.subr.bf16.mxu1 %v2259_v22 }
 0x742   :  { %1267 = vmatpush1.bf16.msra.mxu0 %v2262_v23  ;;  %1308 = vmatpush1.bf16.msra.mxu1 %v2265_v24 }
 0x7e5   :  { %v1164_v9 = vpop.f32.mrf.mxu0  ;;  %v1205_v48 = vpop.f32.mrf.mxu1 }
 0x7e6   :  { %v1212_v39 = vadd.f32 %v1164_v9, %v1126_v8  ;;  %v1214_v16 = vadd.f32 %v1205_v48, %v1128_v13 }
 0x7e7   :  { %v1166_v10 = vpop.f32.mrf.mxu0  ;;  %v1207_v34 = vpop.f32.mrf.mxu1 }
 0x7e8   :  { %v1436_v60 = vmul.f32 -1.442695, %v1212_v39  ;;  %v1213_v62 = vadd.f32 %v1166_v10, %v1127_v33  ;;  %v1215_v5 = vadd.f32 %v1207_v34, %v1129_v3 }
 0x7e9   :  { %v1168_v63 = vpop.f32.mrf.mxu0  ;;  %v1209_v59 = vpop.f32.mrf.mxu1 }
 0x7ea   :  { %1613 = vpow2.f32 %v1436_v60  ;;  %v1437_v61 = vmul.f32 -1.442695, %v1213_v62  ;;  %v1438_v14 = vmul.f32 -1.442695, %v1215_v5 }
 0x7eb   :  { %v1169_v37 = vpop.f32.mrf.mxu0  ;;  %v1210_v2 = vpop.f32.mrf.mxu1 }
 0x7ec   :  { %1615 = vpow2.f32 %v1437_v61 }
 0x7ed   :  { %1617 = vpow2.f32 %v1438_v14 }
 0x7f7   :  { %v1614_v15 = vpop.eup %1613 }
 0x7f8   :  { %v1219_v17 = vadd.f32 1.0, %v1614_v15 }
 0x7f9   :  { %v1616_v18 = vpop.eup %1615 }
 0x7fa   :  { %1619 = vrcp.f32 %v1219_v17  ;;  %v1225_v19 = vadd.f32 1.0, %v1616_v18  ;;  %v1618_v20 = vpop.eup %1617 }
 0x7fb   :  { %1621 = vtanh.f32 %v1214_v16  ;;  %v1232_v24 = vadd.f32 1.0, %v1618_v20 }
 0x7fc   :  { %1623 = vrcp.f32 %v1225_v19 }
 0x7fd   :  { %1625 = vrcp.f32 %v1232_v24 }
 0x807   :  { %v1620_v21 = vpop.eup %1619 }
 0x808   :  { %v1622_v22 = vpop.eup %1621 }
 0x809   :  { %v1624_v23 = vpop.eup %1623  ;;  %v1236_v36 = vmul.f32 %v1622_v22, %v1620_v21 }
 0x80a   :  { %v1235_v43 = vmul.f32 %v1624_v23, %v2275_v32  ;;  %v1626_v11 = vpop.eup %1625 }
 0x80c   :  { %v1237_v1 = vadd.f32 %v1236_v36, %v1235_v43 }
 0x80e   :  { %1627 = vtanh.f32 %v1237_v1 }
 0x81b   :  { %v1628_v45 = vpop.eup %1627 }
 0x81c   :  { %v1239_v12 = vmul.f32 %v1628_v45, %v1626_v11 }
 0x81e   :  { %v1240_v6 = vpack.c.bf16 %v1239_v12, %v1239_v12 }
 0x820   :  { %1242 = vst [vmem:[#allocation8 + $0x18] sm:$0xf] %v1240_v6  ;;  %1285 = vmatmul.mubr.bf16.vlgmr.msra.gmra.mxu0 %v1240_v6  ;;  %1326 = vmatmul.mubr.bf16.vlgmr.msra.gmra.mxu1 %v1240_v6 }
 0x8e0   :  { %v1286_v51 = vpop.f32.mrf.mxu0  ;;  %v1327_v53 = vpop.f32.mrf.mxu1 }
 0x8e1   :  { %v1334_v54 = vadd.f32 %v1286_v51, %v1248_v44  ;;  %v1336_v0 = vadd.f32 %v1327_v53, %v1250_v40 }
 0x8e2   :  { %v1288_v55 = vpop.f32.mrf.mxu0  ;;  %v1329_v56 = vpop.f32.mrf.mxu1 }
 0x8e3   :  { %v1439_v58 = vmul.f32 -1.442695, %v1334_v54  ;;  %v1335_v25 = vadd.f32 %v1288_v55, %v1249_v50  ;;  %v1337_v49 = vadd.f32 %v1329_v56, %v1251_v30 }
 0x8e4   :  { %v1290_v26 = vpop.f32.mrf.mxu0  ;;  %v1331_v27 = vpop.f32.mrf.mxu1 }
 0x8e5   :  { %1629 = vpow2.f32 %v1439_v58  ;;  %v1440_v28 = vmul.f32 -1.442695, %v1335_v25  ;;  %v1441_v41 = vmul.f32 -1.442695, %v1337_v49 }
 0x8e6   :  { %v1291_v31 = vpop.f32.mrf.mxu0  ;;  %v1332_v32 = vpop.f32.mrf.mxu1 }
 0x8e7   :  { %1631 = vpow2.f32 %v1440_v28 }
 0x8e8   :  { %1633 = vpow2.f32 %v1441_v41 }
 0x8f2   :  { %v1630_v42 = vpop.eup %1629 }
 0x8f3   :  { %v1341_v7 = vadd.f32 1.0, %v1630_v42 }
 0x8f4   :  { %v1632_v8 = vpop.eup %1631 }
 0x8f5   :  { %1635 = vrcp.f32 %v1341_v7  ;;  %v1347_v33 = vadd.f32 1.0, %v1632_v8  ;;  %v1634_v9 = vpop.eup %1633 }
 0x8f6   :  { %1637 = vtanh.f32 %v1336_v0  ;;  %v1354_v34 = vadd.f32 1.0, %v1634_v9 }
 0x8f7   :  { %1639 = vrcp.f32 %v1347_v33 }
 0x8f8   :  { %1641 = vrcp.f32 %v1354_v34 }
 0x902   :  { %v1636_v48 = vpop.eup %1635 }
 0x903   :  { %v1638_v39 = vpop.eup %1637 }
 0x904   :  { %v1640_v10 = vpop.eup %1639  ;;  %v1358_v52 = vmul.f32 %v1638_v39, %v1636_v48 }
 0x905   :  { %v1357_v60 = vmul.f32 %v1640_v10, %v1237_v1  ;;  %v1642_v57 = vpop.eup %1641 }
 0x907   :  { %v1359_v62 = vadd.f32 %v1358_v52, %v1357_v60 }
 0x909   :  { %1643 = vtanh.f32 %v1359_v62 }
 0x916   :  { %v1644_v63 = vpop.eup %1643 }
 0x917   :  { %v1361_v59 = vmul.f32 %v1644_v63, %v1642_v57 }
 0x919   :  { %v1362_v61 = vpack.c.bf16 %v1361_v59, %v1361_v59 }
 0x91b   :  { %1364 = vst [vmem:[#allocation8 + $0x1c] sm:$0xf] %v1362_v61 }
 0x91c   :  { %1748 = shalt.err (!%p1745_p5)
}
 0x91d   :  { %s1772_s9 = smov 64   ;;  %s1773_s10 = smov 4  }
 0x91e   :  { %1376 = dma.vmem_to_hbm [thread:$0]  %s1371_s7, 512, %s2326_s4, [#allocation4], %s1772_s9, %s1772_s9, %s1773_s10  }
 0x91f   :  { %1761 = dma.done.wait [#allocation4], 512  }
 0x920   :  { %1762 = vsyncadd [#allocation4], 4294966784 }
 0x921   :  { %1380 = vsyncpa [#allocation3], 1 }
 0x922   :  { %1381 = vsyncpa [#allocation6], 1 }
 0x923   :  { %1382 = vsyncpa [#allocation4], 1 }

</bundles_post_ra>
